<compile_context>
chip_gen: v6e
topology: v6e:2x2x1
jax: 0.10.0
libtpu: 0.0.40
codegen_flags: <defaults>
</compile_context>

<pallas_src>
import functools

import jax
import jax.numpy as jnp
from jax.experimental import pallas as pl
from jax.experimental.pallas import tpu as pltpu


# ----------------------------- Pallas kernel ---------------------------------
def _pair_energy_kernel(flag_ref, dm_ref, mu_ref, w1t_ref, b1_ref, w2t_ref, b2_ref,
                        w3t_ref, b3_ref, out_ref, acc_ref, *, gauss_coeff, use_bf16_eup):
    """One (core_split, pair_tile) grid step, lane-dense over pairs.

    Shapes inside the kernel (TP = pair tile, G = gaussians, H = hidden width):
      flag_ref  (num_tiles,) int32 SMEM  scalar-prefetched "tile has any live pair" flags
      dm_ref    (8, TP)   rows 0-2 = displacement (xi - xj - offsets@cell), row 3 = mask
      mu_ref    (G, 1)    gaussian centers
      w1t/w2t   (H, G)/(H, H)  bf16, pre-transposed (feature-major)
      b1/b2     (H, 1)    f32
      w3t       (1, H)    f32 (cast to match h2 for the per-step contraction)
      b3        (1, 1)    f32
      out_ref   (1, 1, 1) per-core partial energy
      acc_ref   (1, TP)   f32 scratch: sum over grid steps of mask * (w3.h2 + b3)
    """
    step = pl.program_id(1)
    inner = pl.num_programs(1)

    # zero the per-core accumulator on the first step of the (arbitrary) pair axis
    @pl.when(step == 0)
    def _():
        acc_ref[...] = jnp.zeros_like(acc_ref)

    tile_idx = pl.program_id(0) * inner + step

    # skip all compute for tiles whose pairs are all masked out (dead tiles)
    @pl.when(flag_ref[tile_idx] != 0)
    def _compute():
        # --- compute_dis: pair distances (lane-dense, pure VPU) -------------- (1, TP)
        d0 = dm_ref[0:1, :]
        d1 = dm_ref[1:2, :]
        d2 = dm_ref[2:3, :]
        m = dm_ref[3:4, :]                                       # (1, TP) mask row
        r = jnp.sqrt(d0 * d0 + d1 * d1 + d2 * d2)                # (1, TP)

        # --- GaussianSmearing ------------------------------------------------ (G, TP)
        diff = r - mu_ref[...]                                   # (G, TP)
        # clamp: gauss_coeff < 0 so arg <= 0 for the real model; the clamp only protects
        # padded lanes (r = 0) from ever overflowing if the smearing params change.
        arg = jnp.minimum(gauss_coeff * diff * diff, 0.0)
        if use_bf16_eup:
            g = jnp.exp(arg.astype(jnp.bfloat16))                # bf16 EUP exp (v6e/v7x)
        else:
            g = jnp.exp(arg).astype(jnp.bfloat16)                # f32 EUP exp (v5e)

        # --- MLP hidden layers: bf16 MXU matmuls, f32 accumulation ------------
        z1 = jnp.dot(w1t_ref[...], g, preferred_element_type=jnp.float32) + b1_ref[...]
        if use_bf16_eup:
            h1 = jnp.tanh(z1.astype(jnp.bfloat16))               # (H, TP) bf16
        else:
            h1 = jnp.tanh(z1).astype(jnp.bfloat16)
        z2 = jnp.dot(w2t_ref[...], h1, preferred_element_type=jnp.float32) + b2_ref[...]
        if use_bf16_eup:
            h2 = jnp.tanh(z2.astype(jnp.bfloat16))               # (H, TP) bf16
        else:
            h2 = jnp.tanh(z2)                                    # (H, TP) f32

        # --- per-step w3 contraction + masked accumulation into a (1, TP) row -
        # energy_tile = sum_p mask_p * (w3 . h_p + b3)
        w3 = w3t_ref[...].astype(h2.dtype)                       # (1, H)
        e = jnp.dot(w3, h2, preferred_element_type=jnp.float32)  # (1, TP) on the idle MXU
        acc_ref[...] += m * (e + b3_ref[...])                    # (1, TP) f32

    # lane reduce + (1,1) store happen once, on the last step
    @pl.when(step == inner - 1)
    def _():
        out_ref[0] = jnp.sum(acc_ref[...], keepdims=True)        # (1, 1)


# ----------------------------- wrapper ---------------------------------------
def _device_kind():
    try:
        return jax.devices()[0].device_kind.lower()
    except Exception:  # pragma: no cover - defensive
        return ""


def pair_potential_energy(xi, xj, off_vec, mask, params, gauss_coeff,
                          tile=None, num_splits=None, use_bf16_eup=None):
    """Scalar energy = sum_over_pairs MLP(GaussSmear(||xi - xj - off_vec||)) * mask."""
    P = xi.shape[0]
    G = params["mu"].shape[-1]
    H = params["w1"].shape[1]

    kind = _device_kind()
    if use_bf16_eup is None:
        # bf16 EUP/VPU exists on v6e/v7x; keep f32 transcendentals on older chips (v5e etc.)
        use_bf16_eup = ("v6" in kind) or ("v7" in kind) or ("7x" in kind)
    if num_splits is None:
        # 2 TensorCores per chip only on v7x; 1 elsewhere (avoids padded work on small P)
        num_splits = 2 if (("v7" in kind) or ("7x" in kind)) else 1
    if tile is None:
        # small-P default keeps a single grid step; large P amortizes per-step overhead
        tile = 1024 if P <= 8 * 1024 else 4096

    # --- glue: displacement, mask, compaction (live pairs first) --------------
    mask_flat = mask.reshape(P).astype(jnp.float32)
    order = jnp.argsort(-mask_flat)                              # live pairs cluster at front
    d = (xi - xj - off_vec).astype(jnp.float32)[order]           # (P, 3)
    m = mask_flat[order]                                         # (P,)

    chunk = tile * num_splits
    p_pad = ((P + chunk - 1) // chunk) * chunk
    pad = p_pad - P
    inner = p_pad // chunk                                       # reduction steps per core
    num_tiles = num_splits * inner

    # pack [d0, d1, d2, mask, 0, 0, 0, 0] into one sublane-full (8, P) stream
    feats = jnp.concatenate([d, m[:, None], jnp.zeros((P, 4), jnp.float32)], axis=1)
    packed = jnp.pad(feats, ((0, pad), (0, 0))).T                # (8, p_pad)  lane = pairs

    # per-tile "any live pair" flags (scalar-prefetched into SMEM)
    m_pad = jnp.pad(m, (0, pad))
    tile_flags = (m_pad.reshape(num_tiles, tile).max(axis=1) > 0).astype(jnp.int32)

    # feature-major weights (pre-transposed); hidden matmul weights in bf16
    mu_c = params["mu"].reshape(G, 1).astype(jnp.float32)
    w1t = params["w1"].T.astype(jnp.bfloat16)                    # (H, G)
    b1c = params["b1"].reshape(H, 1).astype(jnp.float32)
    w2t = params["w2"].T.astype(jnp.bfloat16)                    # (H, H)
    b2c = params["b2"].reshape(H, 1).astype(jnp.float32)
    w3t = params["w3"].reshape(1, H).astype(jnp.float32)         # contracted per step
    b3c = params["b3"].reshape(1, 1).astype(jnp.float32)

    kern = functools.partial(_pair_energy_kernel, gauss_coeff=float(gauss_coeff),
                             use_bf16_eup=bool(use_bf16_eup))

    # index maps receive the scalar-prefetch ref as a trailing positional arg
    pair_idx = lambda c, i, flags: (0, c * inner + i)            # stream along pair axis
    const_idx = lambda c, i, flags: (0, 0)                       # weights: constant block

    out = pl.pallas_call(
        kern,
        out_shape=jax.ShapeDtypeStruct((num_splits, 1, 1), jnp.float32),
        grid_spec=pltpu.PrefetchScalarGridSpec(
            num_scalar_prefetch=1,                               # tile_flags -> SMEM
            grid=(num_splits, inner),
            in_specs=[
                pl.BlockSpec((8, tile), pair_idx),               # packed d + mask (lane-dense)
                pl.BlockSpec((G, 1), const_idx),                 # gaussian centers
                pl.BlockSpec((H, G), const_idx),                 # W1^T (bf16)
                pl.BlockSpec((H, 1), const_idx),                 # b1
                pl.BlockSpec((H, H), const_idx),                 # W2^T (bf16)
                pl.BlockSpec((H, 1), const_idx),                 # b2
                pl.BlockSpec((1, H), const_idx),                 # w3 (per-step contraction)
                pl.BlockSpec((1, 1), const_idx),                 # b3
            ],
            out_specs=pl.BlockSpec((1, 1, 1), lambda c, i, flags: (c, 0, 0)),
            scratch_shapes=[pltpu.VMEM((1, tile), jnp.float32)], # masked per-pair energy acc
        ),
        compiler_params=pltpu.CompilerParams(
            # axis 0 splits the pair axis across TensorCores (2 on v7x, 1 elsewhere);
            # axis 1 is the sequential reduction over pair tiles.
            dimension_semantics=("parallel", "arbitrary"),
            # working set per step is < 1 MiB even at tile=4096; leave headroom for XLA
            vmem_limit_bytes=8 * 1024 * 1024,
        ),
    )(tile_flags, packed, mu_c, w1t, b1c, w2t, b2c, w3t, b3c)
    return jnp.sum(out)                                          # add per-core partials


# ----------------------------- pure-JAX references ----------------------------
def reference_energy_f32(xi, xj, off_vec, mask, params, gauss_coeff):
    d = xi - xj - off_vec
    r = jnp.sqrt(jnp.sum(d * d, axis=-1, keepdims=True))
    diff = r - params["mu"]
    g = jnp.exp(gauss_coeff * diff * diff)
    h = jnp.tanh(g @ params["w1"] + params["b1"])
    h = jnp.tanh(h @ params["w2"] + params["b2"])
    e = h @ params["w3"] + params["b3"]
    return jnp.sum(e * mask.reshape(-1, 1))


def reference_energy_matching(xi, xj, off_vec, mask, params, gauss_coeff, use_bf16_eup):
    """Same precision choices as the kernel (bf16 matmuls; bf16 exp/tanh iff the kernel uses them)."""
    d = (xi - xj - off_vec).astype(jnp.float32)
    r = jnp.sqrt(jnp.sum(d * d, axis=-1, keepdims=True))
    diff = r - params["mu"]
    arg = jnp.minimum(gauss_coeff * diff * diff, 0.0)
    if use_bf16_eup:
        g = jnp.exp(arg.astype(jnp.bfloat16))
    else:
        g = jnp.exp(arg).astype(jnp.bfloat16)
    z1 = jnp.dot(g, params["w1"].astype(jnp.bfloat16),
                 preferred_element_type=jnp.float32) + params["b1"]
    h1 = jnp.tanh(z1.astype(jnp.bfloat16)) if use_bf16_eup else jnp.tanh(z1).astype(jnp.bfloat16)
    z2 = jnp.dot(h1, params["w2"].astype(jnp.bfloat16),
                 preferred_element_type=jnp.float32) + params["b2"]
    if use_bf16_eup:
        h2 = jnp.tanh(z2.astype(jnp.bfloat16))
        e = jnp.dot(h2, params["w3"].astype(jnp.bfloat16),
                    preferred_element_type=jnp.float32) + params["b3"]
    else:
        h2 = jnp.tanh(z2)
        e = h2 @ params["w3"] + params["b3"]
    return jnp.sum(e * mask.reshape(-1, 1))


# ----------------------------- parameter / input setup ------------------------
def init_pair_mlp_params(key, n_gauss, n_width, r_start, r_end):
    """Deterministic pairMLP parameters: GaussianSmearing + Linear/tanh/Linear/tanh/Linear."""
    mu = jnp.linspace(r_start, r_end, n_gauss, dtype=jnp.float32).reshape(1, n_gauss)
    width = float(mu[0, 1] - mu[0, 0])
    gauss_coeff = -0.5 / (width * width)

    ks = jax.random.split(key, 6)

    def lin(kw, kb, fan_in, fan_out):
        s = 1.0 / jnp.sqrt(fan_in)
        w = jax.random.uniform(kw, (fan_in, fan_out), jnp.float32, -s, s)
        b = jax.random.uniform(kb, (1, fan_out), jnp.float32, -s, s)
        return w, b

    w1, b1 = lin(ks[0], ks[1], n_gauss, n_width)
    w2, b2 = lin(ks[2], ks[3], n_width, n_width)
    w3, b3 = lin(ks[4], ks[5], n_width, 1)

    params = dict(mu=mu, w1=w1, b1=b1, w2=w2, b2=b2, w3=w3, b3=b3)
    return params, gauss_coeff


if __name__ == "__main__":
    key = jax.random.PRNGKey(0)
    k_pos, k_mlp = jax.random.split(key)

    # --- "System": 32 atoms in a cubic periodic box, cutoff 2.5 --------------
    N = 32
    L = 10.0
    cutoff = 2.5
    cell = (L * jnp.eye(3)).astype(jnp.float32)                        # (3, 3)
    xyz = (jax.random.uniform(k_pos, (N, 3), jnp.float32) * L)         # (N, 3)

    # --- pairMLP: 64 gaussians on [0, cutoff], hidden width 64, tanh ---------
    n_gauss, n_width = 64, 64
    params, gauss_coeff = init_pair_mlp_params(k_mlp, n_gauss, n_width, 0.0, cutoff)

    # --- neighbor list (normally from generate_nbr_list in __init__) ---------
    # TODO(synk): generate_nbr_list's cell-list search stays plain-JAX glue
    # (all i<j pairs + minimum-image offsets, cutoff enforced via the mask).
    ii, jj = jnp.triu_indices(N, k=1)
    nbr_list = jnp.stack([ii, jj], axis=1)                             # (P, 2)
    xi = xyz[nbr_list[:, 0]]                                           # (P, 3) gather = glue
    xj = xyz[nbr_list[:, 1]]
    raw = xi - xj
    offsets = jnp.round(raw @ jnp.linalg.inv(cell))                    # fractional image shifts
    off_vec = (offsets @ cell).astype(jnp.float32)                     # (P, 3)
    r_min_img = jnp.sqrt(jnp.sum((raw - off_vec) ** 2, axis=-1, keepdims=True))
    within_cutoff = (r_min_img < cutoff).astype(jnp.float32)           # (P, 1)

    # --- run kernel (wrapper pads / sorts the pair axis internally) ----------
    kind = _device_kind()
    use_bf16_eup = ("v6" in kind) or ("v7" in kind) or ("7x" in kind)
    energy = pair_potential_energy(xi, xj, off_vec, within_cutoff, params, gauss_coeff)
    energy = jax.block_until_ready(energy)

    # --- correctness: matching-precision reference -----------------------------
    # (hardware bf16 exp/tanh vs XLA's may differ by a ulp per element, so the
    #  matching-precision tolerance is looser than pure accumulation-order noise)
    ref_match = jax.block_until_ready(
        reference_energy_matching(xi, xj, off_vec, within_cutoff, params, gauss_coeff,
                                  use_bf16_eup))
    rel_err = abs(float(energy) - float(ref_match)) / max(1.0, abs(float(ref_match)))
    if rel_err > 2e-2:
        raise AssertionError(
            f"mismatch vs matching-precision reference: kernel={float(energy)} "
            f"ref={float(ref_match)} rel_err={rel_err}")

    # --- sanity: full-f32 reference bounds the bf16 drift ----------------------
    ref_f32 = jax.block_until_ready(
        reference_energy_f32(xi, xj, off_vec, within_cutoff, params, gauss_coeff))
    rel_err_f32 = abs(float(energy) - float(ref_f32)) / max(1.0, abs(float(ref_f32)))
    if rel_err_f32 > 5e-2:
        raise AssertionError(
            f"bf16 drift too large: kernel={float(energy)} ref_f32={float(ref_f32)} "
            f"rel_err={rel_err_f32}")

    print("KERNEL_OK")
</pallas_src>

<mosaic_0001>
module attributes {stable_mosaic.version = 11 : i64} {
  func.func @_pair_energy_kernel(%arg0: i32, %arg1: i32, %arg2: memref<1xi32, #tpu.memory_space<smem>>, %arg3: memref<8x1024xf32, #tpu.memory_space<vmem>>, %arg4: memref<64x1xf32, #tpu.memory_space<vmem>>, %arg5: memref<64x64xbf16, #tpu.memory_space<vmem>>, %arg6: memref<64x1xf32, #tpu.memory_space<vmem>>, %arg7: memref<64x64xbf16, #tpu.memory_space<vmem>>, %arg8: memref<64x1xf32, #tpu.memory_space<vmem>>, %arg9: memref<1x64xf32, #tpu.memory_space<vmem>>, %arg10: memref<1x1xf32, #tpu.memory_space<vmem>>, %arg11: memref<1x1x1xf32, #tpu.memory_space<vmem>>, %arg12: memref<1x1024xf32, #tpu.memory_space<vmem>>) attributes {dimension_semantics = [#tpu.dimension_semantics<parallel>, #tpu.dimension_semantics<arbitrary>], iteration_bounds = array<i64: 1, 1>, scalar_prefetch = 1 : i64, scratch_operands = 1 : i64, tpu.core_type = #tpu.core_type<tc>, window_params = [{transform_indices = @transform_0, window_bounds = array<i64: 8, 1024>}, {pipeline_mode = #tpu.pipeline_mode<synchronous>, transform_indices = @transform_1, window_bounds = array<i64: 64, 1>}, {pipeline_mode = #tpu.pipeline_mode<synchronous>, transform_indices = @transform_2, window_bounds = array<i64: 64, 64>}, {pipeline_mode = #tpu.pipeline_mode<synchronous>, transform_indices = @transform_3, window_bounds = array<i64: 64, 1>}, {pipeline_mode = #tpu.pipeline_mode<synchronous>, transform_indices = @transform_4, window_bounds = array<i64: 64, 64>}, {pipeline_mode = #tpu.pipeline_mode<synchronous>, transform_indices = @transform_5, window_bounds = array<i64: 64, 1>}, {pipeline_mode = #tpu.pipeline_mode<synchronous>, transform_indices = @transform_6, window_bounds = array<i64: 1, 64>}, {pipeline_mode = #tpu.pipeline_mode<synchronous>, transform_indices = @transform_7, window_bounds = array<i64: 1, 1>}, {transform_indices = @transform_8, window_bounds = array<i64: 1, 1, 1>}]} {
    %c0_i32 = arith.constant 0 : i32
    %0 = arith.cmpi eq, %arg1, %c0_i32 : i32
    %1 = arith.extui %0 : i1 to i32
    %c0_i32_0 = arith.constant 0 : i32
    %2 = arith.cmpi ne, %1, %c0_i32_0 : i32
    scf.if %2 {
      %cst = arith.constant 0.000000e+00 : f32
      %13 = vector.broadcast %cst : f32 to vector<1x1024xf32>
      %c0 = arith.constant 0 : index
      %c0_5 = arith.constant 0 : index
      %14 = vector.load %arg12[%c0, %c0_5] : memref<1x1024xf32, #tpu.memory_space<vmem>>, vector<1x1024xf32>
      tpu.vector_store %arg12[%c0, %c0_5], %13 {strides = array<i32>} : memref<1x1024xf32, #tpu.memory_space<vmem>>, vector<1x1024xf32>,
    } else {
    }
    %c1_i32 = arith.constant 1 : i32
    %3 = arith.muli %arg0, %c1_i32 : i32
    %4 = arith.addi %3, %arg1 : i32
    %5 = arith.index_cast %4 : i32 to index
    %6 = memref.load %arg2[%5] : memref<1xi32, #tpu.memory_space<smem>>
    %c0_i32_1 = arith.constant 0 : i32
    %7 = arith.cmpi ne, %6, %c0_i32_1 : i32
    %8 = arith.extui %7 : i1 to i32
    %c0_i32_2 = arith.constant 0 : i32
    %9 = arith.cmpi ne, %8, %c0_i32_2 : i32
    scf.if %9 {
      %c0 = arith.constant 0 : index
      %c0_5 = arith.constant 0 : index
      %13 = vector.load %arg3[%c0, %c0_5] : memref<8x1024xf32, #tpu.memory_space<vmem>>, vector<1x1024xf32>
      %c1 = arith.constant 1 : index
      %c0_6 = arith.constant 0 : index
      %14 = vector.load %arg3[%c1, %c0_6] : memref<8x1024xf32, #tpu.memory_space<vmem>>, vector<1x1024xf32>
      %c2 = arith.constant 2 : index
      %c0_7 = arith.constant 0 : index
      %15 = vector.load %arg3[%c2, %c0_7] : memref<8x1024xf32, #tpu.memory_space<vmem>>, vector<1x1024xf32>
      %c3 = arith.constant 3 : index
      %c0_8 = arith.constant 0 : index
      %16 = vector.load %arg3[%c3, %c0_8] : memref<8x1024xf32, #tpu.memory_space<vmem>>, vector<1x1024xf32>
      %17 = arith.mulf %13, %13 : vector<1x1024xf32>
      %18 = arith.mulf %14, %14 : vector<1x1024xf32>
      %19 = arith.addf %17, %18 : vector<1x1024xf32>
      %20 = arith.mulf %15, %15 : vector<1x1024xf32>
      %21 = arith.addf %19, %20 : vector<1x1024xf32>
      %22 = math.sqrt %21 : vector<1x1024xf32>
      %c0_9 = arith.constant 0 : index
      %c0_10 = arith.constant 0 : index
      %23 = vector.load %arg4[%c0_9, %c0_10] : memref<64x1xf32, #tpu.memory_space<vmem>>, vector<64x1xf32>
      %24 = vector.broadcast %22 : vector<1x1024xf32> to vector<64x1024xf32>
      %25 = vector.broadcast %23 : vector<64x1xf32> to vector<64x1024xf32>
      %26 = arith.subf %24, %25 : vector<64x1024xf32>
      %cst = arith.constant -3.175200e+02 : f32
      %27 = vector.broadcast %cst : f32 to vector<64x1024xf32>
      %28 = arith.mulf %27, %26 : vector<64x1024xf32>
      %29 = arith.mulf %28, %26 : vector<64x1024xf32>
      %cst_11 = arith.constant 0.000000e+00 : f32
      %30 = vector.broadcast %cst_11 : f32 to vector<64x1024xf32>
      %31 = arith.minimumf %29, %30 : vector<64x1024xf32>
      %32 = math.exp %31 : vector<64x1024xf32>
      %33 = arith.truncf %32 : vector<64x1024xf32> to vector<64x1024xbf16>
      %c0_12 = arith.constant 0 : index
      %c0_13 = arith.constant 0 : index
      %34 = vector.load %arg5[%c0_12, %c0_13] : memref<64x64xbf16, #tpu.memory_space<vmem>>, vector<64x64xbf16>
      %cst_14 = arith.constant dense<0.000000e+00> : vector<64x1024xf32>
      %35 = tpu.matmul %34, %33, %cst_14 {dimension_numbers = #tpu.dot_dimension_numbers<[1], [0], [0], [1], [0, 0, 1, 1], [], []>} : vector<64x64xbf16>, vector<64x1024xbf16>, vector<64x1024xf32> -> vector<64x1024xf32>
      %c0_15 = arith.constant 0 : index
      %c0_16 = arith.constant 0 : index
      %36 = vector.load %arg6[%c0_15, %c0_16] : memref<64x1xf32, #tpu.memory_space<vmem>>, vector<64x1xf32>
      %37 = vector.broadcast %36 : vector<64x1xf32> to vector<64x1024xf32>
      %38 = arith.addf %35, %37 : vector<64x1024xf32>
      %39 = math.tanh %38 : vector<64x1024xf32>
      %40 = arith.truncf %39 : vector<64x1024xf32> to vector<64x1024xbf16>
      %c0_17 = arith.constant 0 : index
      %c0_18 = arith.constant 0 : index
      %41 = vector.load %arg7[%c0_17, %c0_18] : memref<64x64xbf16, #tpu.memory_space<vmem>>, vector<64x64xbf16>
      %cst_19 = arith.constant dense<0.000000e+00> : vector<64x1024xf32>
      %42 = tpu.matmul %41, %40, %cst_19 {dimension_numbers = #tpu.dot_dimension_numbers<[1], [0], [0], [1], [0, 0, 1, 1], [], []>} : vector<64x64xbf16>, vector<64x1024xbf16>, vector<64x1024xf32> -> vector<64x1024xf32>
      %c0_20 = arith.constant 0 : index
      %c0_21 = arith.constant 0 : index
      %43 = vector.load %arg8[%c0_20, %c0_21] : memref<64x1xf32, #tpu.memory_space<vmem>>, vector<64x1xf32>
      %44 = vector.broadcast %43 : vector<64x1xf32> to vector<64x1024xf32>
      %45 = arith.addf %42, %44 : vector<64x1024xf32>
      %46 = math.tanh %45 : vector<64x1024xf32>
      %c0_22 = arith.constant 0 : index
      %c0_23 = arith.constant 0 : index
      %47 = vector.load %arg9[%c0_22, %c0_23] : memref<1x64xf32, #tpu.memory_space<vmem>>, vector<1x64xf32>
      %cst_24 = arith.constant dense<0.000000e+00> : vector<1x1024xf32>
      %48 = tpu.matmul %47, %46, %cst_24 {dimension_numbers = #tpu.dot_dimension_numbers<[1], [0], [0], [1], [0, 0, 1, 1], [], []>} : vector<1x64xf32>, vector<64x1024xf32>, vector<1x1024xf32> -> vector<1x1024xf32>
      %c0_25 = arith.constant 0 : index
      %c0_26 = arith.constant 0 : index
      %49 = vector.load %arg12[%c0_25, %c0_26] : memref<1x1024xf32, #tpu.memory_space<vmem>>, vector<1x1024xf32>
      %c0_27 = arith.constant 0 : index
      %c0_28 = arith.constant 0 : index
      %50 = vector.load %arg10[%c0_27, %c0_28] : memref<1x1xf32, #tpu.memory_space<vmem>>, vector<1x1xf32>
      %51 = vector.broadcast %50 : vector<1x1xf32> to vector<1x1024xf32>
      %52 = arith.addf %48, %51 : vector<1x1024xf32>
      %53 = arith.mulf %16, %52 : vector<1x1024xf32>
      %54 = arith.addf %49, %53 : vector<1x1024xf32>
      %c0_29 = arith.constant 0 : index
      %c0_30 = arith.constant 0 : index
      %55 = vector.load %arg12[%c0_29, %c0_30] : memref<1x1024xf32, #tpu.memory_space<vmem>>, vector<1x1024xf32>
      tpu.vector_store %arg12[%c0_29, %c0_30], %54 {strides = array<i32>} : memref<1x1024xf32, #tpu.memory_space<vmem>>, vector<1x1024xf32>,
    } else {
    }
    %c0_i32_3 = arith.constant 0 : i32
    %10 = arith.cmpi eq, %arg1, %c0_i32_3 : i32
    %11 = arith.extui %10 : i1 to i32
    %c0_i32_4 = arith.constant 0 : i32
    %12 = arith.cmpi ne, %11, %c0_i32_4 : i32
    scf.if %12 {
      %c0 = arith.constant 0 : index
      %c0_5 = arith.constant 0 : index
      %13 = vector.load %arg12[%c0, %c0_5] : memref<1x1024xf32, #tpu.memory_space<vmem>>, vector<1x1024xf32>
      %14 = vector.shape_cast %13 : vector<1x1024xf32> to vector<1x1x1024xf32>
      %cst = arith.constant dense<0.000000e+00> : vector<1xf32>
      %15 = vector.multi_reduction <add>, %14, %cst [1, 2] : vector<1x1x1024xf32> to vector<1xf32>
      %16 = vector.shape_cast %15 : vector<1xf32> to vector<1x1x1xf32>
      %17 = vector.extract %16[0, 0, 0] : f32 from vector<1x1x1xf32>
      %18 = vector.broadcast %17 : f32 to vector<1x1xf32>
      %c0_6 = arith.constant 0 : index
      %c0_7 = arith.constant 0 : index
      %c0_8 = arith.constant 0 : index
      %19 = vector.load %arg11[%c0_6, %c0_7, %c0_8] : memref<1x1x1xf32, #tpu.memory_space<vmem>>, vector<1x1x1xf32>
      %20 = vector.shape_cast %19 : vector<1x1x1xf32> to vector<1x1xf32>
      %21 = vector.shape_cast %18 : vector<1x1xf32> to vector<1x1x1xf32>
      tpu.vector_store %arg11[%c0_6, %c0_7, %c0_8], %21 {strides = array<i32>} : memref<1x1x1xf32, #tpu.memory_space<vmem>>, vector<1x1x1xf32>,
    } else {
    }
    return
  }
  func.func @transform_0(%arg0: i32, %arg1: i32, %arg2: memref<1xi32, #tpu.memory_space<smem>>) -> (i32, i32) {
    %c1_i32 = arith.constant 1 : i32
    %0 = arith.muli %arg0, %c1_i32 : i32
    %1 = arith.addi %0, %arg1 : i32
    %c0_i32 = arith.constant 0 : i32
    %c0_i32_0 = arith.constant 0 : i32
    return %c0_i32, %1 : i32, i32
  }
  func.func @transform_1(%arg0: i32, %arg1: i32, %arg2: memref<1xi32, #tpu.memory_space<smem>>) -> (i32, i32) {
    %c0_i32 = arith.constant 0 : i32
    %c0_i32_0 = arith.constant 0 : i32
    %c0_i32_1 = arith.constant 0 : i32
    return %c0_i32, %c0_i32_0 : i32, i32
  }
  func.func @transform_2(%arg0: i32, %arg1: i32, %arg2: memref<1xi32, #tpu.memory_space<smem>>) -> (i32, i32) {
    %c0_i32 = arith.constant 0 : i32
    %c0_i32_0 = arith.constant 0 : i32
    %c0_i32_1 = arith.constant 0 : i32
    return %c0_i32, %c0_i32_0 : i32, i32
  }
  func.func @transform_3(%arg0: i32, %arg1: i32, %arg2: memref<1xi32, #tpu.memory_space<smem>>) -> (i32, i32) {
    %c0_i32 = arith.constant 0 : i32
    %c0_i32_0 = arith.constant 0 : i32
    %c0_i32_1 = arith.constant 0 : i32
    return %c0_i32, %c0_i32_0 : i32, i32
  }
  func.func @transform_4(%arg0: i32, %arg1: i32, %arg2: memref<1xi32, #tpu.memory_space<smem>>) -> (i32, i32) {
    %c0_i32 = arith.constant 0 : i32
    %c0_i32_0 = arith.constant 0 : i32
    %c0_i32_1 = arith.constant 0 : i32
    return %c0_i32, %c0_i32_0 : i32, i32
  }
  func.func @transform_5(%arg0: i32, %arg1: i32, %arg2: memref<1xi32, #tpu.memory_space<smem>>) -> (i32, i32) {
    %c0_i32 = arith.constant 0 : i32
    %c0_i32_0 = arith.constant 0 : i32
    %c0_i32_1 = arith.constant 0 : i32
    return %c0_i32, %c0_i32_0 : i32, i32
  }
  func.func @transform_6(%arg0: i32, %arg1: i32, %arg2: memref<1xi32, #tpu.memory_space<smem>>) -> (i32, i32) {
    %c0_i32 = arith.constant 0 : i32
    %c0_i32_0 = arith.constant 0 : i32
    %c0_i32_1 = arith.constant 0 : i32
    return %c0_i32, %c0_i32_0 : i32, i32
  }
  func.func @transform_7(%arg0: i32, %arg1: i32, %arg2: memref<1xi32, #tpu.memory_space<smem>>) -> (i32, i32) {
    %c0_i32 = arith.constant 0 : i32
    %c0_i32_0 = arith.constant 0 : i32
    %c0_i32_1 = arith.constant 0 : i32
    return %c0_i32, %c0_i32_0 : i32, i32
  }
  func.func @transform_8(%arg0: i32, %arg1: i32, %arg2: memref<1xi32, #tpu.memory_space<smem>>) -> (i32, i32, i32) {
    %c0_i32 = arith.constant 0 : i32
    %c0_i32_0 = arith.constant 0 : i32
    %c0_i32_1 = arith.constant 0 : i32
    return %arg0, %c0_i32, %c0_i32_0 : i32, i32, i32
  }
}

</mosaic_0001>

<bundles_post_ra>
// kernel: tpu_custom_call.1
= control target key start
LH: loop header
LB: loop body
LE: loop exit
PB: predicated region body
PF: predicated region fallthrough
CT: control target
= control target key end

     0   :  { %s3501_s0 = inlined_call_operand.<no memory space> [shape: s32[1], index: 0, kind: input, shape index: {}]   ;;  %s3502_s1 = inlined_call_operand.vmem [shape: f32[8,1024], index: 1, kind: input, shape index: {}]   ;;  %s3503_s2 = inlined_call_operand.vmem [shape: f32[64,1], index: 2, kind: input, shape index: {}]   ;;  %s3504_s3 = inlined_call_operand.vmem [shape: bf16[64,64], index: 3, kind: input, shape index: {}]   ;;  %s3505_s4 = inlined_call_operand.vmem [shape: f32[64,1], index: 4, kind: input, shape index: {}]   ;;  %s3506_s5 = inlined_call_operand.vmem [shape: bf16[64,64], index: 5, kind: input, shape index: {}]   ;;  %s3507_s6 = inlined_call_operand.vmem [shape: f32[64,1], index: 6, kind: input, shape index: {}]   ;;  %s3508_s7 = inlined_call_operand.vmem [shape: f32[1,64], index: 7, kind: input, shape index: {}]   ;;  %s3509_s8 = inlined_call_operand.<no memory space> [shape: f32[1,1], index: 8, kind: input, shape index: {}]   ;;  %s3510_s9 = inlined_call_operand.hbm [shape: f32[1,1,1], index: 9, kind: output, shape index: {}]  }
   0x1   :  { %v15_v0 = vstv %s3509_s8 }
   0x2   :  { %16 = vst [vmem:[#allocation5] sm:$0x1] %v15_v0 }
   0x3   :  { %17 = vsyncpa [#allocation7], 0  ;;  %v2450_v1 = vmov 0.0   ;;  %p1974_p0 = scmp.eq.s32.totalorder %s3501_s0, 0 }
   0x4   :  { %61 = vst [vmem:[#allocation2] sm:$0xff] %v2450_v1 }
   0x5   :  { %67 = sbr.rel (%p1974_p0) target bundleno = 985 (0x3d9), region = 41 }
   0xa   :  { %v101_v2 = vld [vmem:[%s3503_s2 + $0x30] sm:$0xff]  ;;  %v99_v3 = vld [vmem:[%s3503_s2 + $0x20] sm:$0xff]  ;;  %v3512_v4 = vmov 0   ;;  %v102_v5 = vld [vmem:[%s3503_s2 + $0x38] sm:$0xff]  ;;  %v104_v43 = vlaneseq  ;;  %vm676_vm2 = vcmask 523264  }
   0xb   :  { %2033 = vset.pattern.permute.xlu1 %v3512_v4  ;;  %2032 = vset.pattern.permute.xlu0 %v3512_v4  ;;  %v100_v6 = vld [vmem:[%s3503_s2 + $0x28] sm:$0xff]  ;;  %v98_v7 = vld [vmem:[%s3503_s2 + $0x18] sm:$0xff]  ;;  %v97_v8 = vld [vmem:[%s3503_s2 + $0x10] sm:$0xff] }
   0xc   :  { %176 = vperm.xlu0 %2032, %v101_v2   ;;  %166 = vperm.xlu1 %2033, %v99_v3   ;;  %v96_v9 = vld [vmem:[%s3503_s2 + $0x8] sm:$0xff]  ;;  %v95_v10 = vld [vmem:[%s3503_s2] sm:$0xff]  ;;  %v615_v11 = vld [vmem:[%s3505_s4 + $0x38] sm:$0xff]  ;;  %v2605_v45 = vshrl.u32 %v104_v43, 7 }
   0xd   :  { %721 = vmatprep.mubr.bf16.mxu0 %v3512_v4  ;;  %794 = vmatprep.mubr.bf16.mxu1 %v3512_v4  ;;  %v614_v12 = vld [vmem:[%s3505_s4 + $0x30] sm:$0xff]  ;;  %v613_v13 = vld [vmem:[%s3505_s4 + $0x28] sm:$0xff]  ;;  %v612_v14 = vld [vmem:[%s3505_s4 + $0x20] sm:$0xff] }
   0xe   :  { %v611_v15 = vld [vmem:[%s3505_s4 + $0x18] sm:$0xff]  ;;  %v610_v16 = vld [vmem:[%s3505_s4 + $0x10] sm:$0xff]  ;;  %v609_v17 = vld [vmem:[%s3505_s4 + $0x8] sm:$0xff]  ;;  %3534 = vst [vmem:[#allocation9_spill] sm:$0xff] %v2605_v45  ;;  %v122_v48 = vsub.s32 4, %v2605_v45  ;;  %v130_v49 = vsub.s32 6, %v2605_v45 }
   0xf   :  { %v608_v18 = vld [vmem:[%s3505_s4] sm:$0xff]  ;;  %v1091_v19 = vld [vmem:[%s3507_s6 + $0x30] sm:$0xff]  ;;  %v1092_v20 = vld [vmem:[%s3507_s6 + $0x38] sm:$0xff]  ;;  %v126_v50 = vsub.s32 5, %v2605_v45  ;;  %v134_v52 = vsub.s32 7, %v2605_v45  ;;  %v3511_v55 = vsub.s32 0, %v2605_v45 }
  0x10   :  { %181 = vperm.xlu0 %2032, %v102_v5   ;;  %171 = vperm.xlu1 %2033, %v100_v6   ;;  %v1089_v21 = vld [vmem:[%s3507_s6 + $0x20] sm:$0xff]  ;;  %v1090_v22 = vld [vmem:[%s3507_s6 + $0x28] sm:$0xff]  ;;  %v1087_v23 = vld [vmem:[%s3507_s6 + $0x10] sm:$0xff]  ;;  %v110_v57 = vsub.s32 1, %v2605_v45  ;;  %v114_v58 = vsub.s32 2, %v2605_v45  ;;  %v118_v59 = vsub.s32 3, %v2605_v45 }
  0x11   :  { %v1088_v24 = vld [vmem:[%s3507_s6 + $0x18] sm:$0xff]  ;;  %v1085_v25 = vld [vmem:[%s3507_s6] sm:$0xff]  ;;  %v1086_v26 = vld [vmem:[%s3507_s6 + $0x8] sm:$0xff] }
  0x12   :  { %v1523_v27 = vld [vmem:[#allocation5] sm:$0x1]  ;;  %v1975_v30 = vld [vmem:[%s3502_s1 + $0x1] ss:$8 sm:$0xf] }
  0x13   :  { %v68_v28 = vld [vmem:[%s3502_s1] ss:$8 sm:$0xf]  ;;  %v1976_v31 = vld [vmem:[%s3502_s1 + $0x1] ss:$8 sm:$0xf0] }
  0x14   :  { %161 = vperm.xlu1 %2033, %v98_v7   ;;  %156 = vperm.xlu0 %2032, %v97_v8   ;;  %v69_v29 = vld [vmem:[%s3502_s1] ss:$8 sm:$0xf0]  ;;  %v74_v33 = vor.u32 %v1976_v31, %v1975_v30  ;;  %v1977_v34 = vld [vmem:[%s3502_s1 + $0x2] ss:$8 sm:$0xf] }
  0x15   :  { %v70_v32 = vor.u32 %v69_v29, %v68_v28  ;;  %v1978_v35 = vld [vmem:[%s3502_s1 + $0x2] ss:$8 sm:$0xf0] }
  0x16   :  { %v78_v36 = vor.u32 %v1978_v35, %v1977_v34  ;;  %v84_v38 = vmul.f32 %v74_v33, %v74_v33 }
  0x17   :  { %v83_v37 = vmul.f32 %v70_v32, %v70_v32 }
  0x18   :  { %151 = vperm.xlu1 %2033, %v96_v9   ;;  %146 = vperm.xlu0 %2032, %v95_v10   ;;  %v86_v40 = vmul.f32 %v78_v36, %v78_v36 }
  0x19   :  { %v85_v39 = vadd.f32 %v84_v38, %v83_v37 }
  0x1b   :  { %v87_v41 = vadd.f32 %v86_v40, %v85_v39 }
  0x1c   :  { %653 = vperm.xlu1 %2033, %v615_v11   ;;  %648 = vperm.xlu0 %2032, %v614_v12  }
  0x1d   :  { %2042 = vrsqrt.f32 %v87_v41  ;;  %vm90_vm0 = vcmp.eq.f32.partialorder %v87_v41, inf  ;;  %v93_v46 = vand.u32 2147483648, %v87_v41  ;;  %vm92_vm1 = vcmp.eq.f32.partialorder %v87_v41, 0.0 }
  0x20   :  { %643 = vperm.xlu1 %2033, %v613_v13   ;;  %638 = vperm.xlu0 %2032, %v612_v14  }
  0x24   :  { %633 = vperm.xlu1 %2033, %v611_v15   ;;  %628 = vperm.xlu0 %2032, %v610_v16  }
  0x28   :  { %623 = vperm.xlu1 %2033, %v609_v17   ;;  %618 = vperm.xlu0 %2032, %v608_v18  }
  0x2a   :  { %v2043_v42 = vpop.eup %2042 }
  0x2b   :  { %v89_v44 = vmul.f32 %v2043_v42, %v87_v41 }
  0x2c   :  { %1125 = vperm.xlu1 %2033, %v1091_v19   ;;  %1130 = vperm.xlu0 %2032, %v1092_v20  }
  0x2d   :  { %v91_v47 = vsel %vm90_vm0, %v87_v41, %v89_v44 }
  0x2e   :  { %v94_v51 = vsel %vm92_vm1, %v93_v46, %v91_v47 }
  0x2f   :  { %v2611_v53 = vrot.slane %v94_v51, %v122_v48  ;;  %v2613_v54 = vrot.slane %v94_v51, %v130_v49  ;;  %v2616_v56 = vrot.slane %v94_v51, %v126_v50  ;;  %v2621_v60 = vrot.slane %v94_v51, %v134_v52 }
  0x30   :  { %1115 = vperm.xlu1 %2033, %v1089_v21   ;;  %1120 = vperm.xlu0 %2032, %v1090_v22   ;;  %v2631_v1 = vrot.slane %v94_v51, %v3511_v55  ;;  %v2637_v3 = vrot.slane %v94_v51, %v110_v57  ;;  %v2639_v5 = vrot.slane %v94_v51, %v114_v58 }
  0x31   :  { %v2641_v6 = vrot.slane %v94_v51, %v118_v59 }
  0x34   :  { %1105 = vperm.xlu1 %2033, %v1087_v23   ;;  %1110 = vperm.xlu0 %2032, %v1088_v24  }
  0x38   :  { %1095 = vperm.xlu1 %2033, %v1085_v25   ;;  %1100 = vperm.xlu0 %2032, %v1086_v26  }
  0x3c   :  { %1526 = vperm.xlu0 %2032, %v1523_v27  }
  0x87   :  { %v2623_v61 = vpop.permute.xlu0 %176  ;;  %v167_v62 = vpop.permute.xlu1 %166 }
  0x88   :  { %v236_v63 = vsub.f32 %v2611_v53, %v2623_v61  ;;  %v238_v0 = vsub.f32 %v2613_v54, %v2623_v61  ;;  %v2635_v2 = vsub.f32 %v2616_v56, %v2623_v61  ;;  %v2645_v7 = vsub.f32 %v2621_v60, %v2623_v61 }
  0x89   :  { %v220_v10 = vsub.f32 %v2611_v53, %v167_v62  ;;  %v2649_v11 = vsub.f32 %v2631_v1, %v167_v62  ;;  %v2652_v12 = vsub.f32 %v2637_v3, %v167_v62  ;;  %v2655_v13 = vsub.f32 %v2639_v5, %v167_v62 }
  0x8a   :  { %v300_v8 = vmul.f32 -317.52, %v236_v63  ;;  %v302_v9 = vmul.f32 -317.52, %v238_v0  ;;  %v222_v14 = vsub.f32 %v2613_v54, %v167_v62  ;;  %v2667_v21 = vsub.f32 %v2641_v6, %v167_v62 }
  0x8b   :  { %v2658_v15 = vpop.permute.xlu0 %181  ;;  %v172_v16 = vpop.permute.xlu1 %171  ;;  %v284_v19 = vmul.f32 -317.52, %v220_v10  ;;  %v2670_v22 = vsub.f32 %v2616_v56, %v167_v62  ;;  %v2675_v25 = vsub.f32 %v2621_v60, %v167_v62  ;;  %v2681_v28 = vsub.f32 %v2637_v3, %v2623_v61 }
  0x8c   :  { %v2660_v17 = vmul.f32 %v300_v8, %v236_v63  ;;  %v2662_v18 = vmul.f32 %v302_v9, %v238_v0  ;;  %v244_v20 = vsub.f32 %v2611_v53, %v2658_v15  ;;  %v286_v23 = vmul.f32 -317.52, %v222_v14 }
  0x8d   :  { %v246_v24 = vsub.f32 %v2613_v54, %v2658_v15  ;;  %3535 = vst [vmem:[#allocation10_spill] sm:$0xff] %v2675_v25  ;;  %v2677_v26 = vmul.f32 %v284_v19, %v220_v10  ;;  %v2687_v30 = vsub.f32 %v2616_v56, %v2658_v15  ;;  %v2691_v32 = vsub.f32 %v2641_v6, %v2623_v61 }
  0x8e   :  { %v308_v27 = vmul.f32 -317.52, %v244_v20  ;;  %v2683_v29 = vmul.f32 %v286_v23, %v222_v14  ;;  %v2697_v35 = vsub.f32 %v2621_v60, %v2658_v15  ;;  %v2704_v38 = vsub.f32 %v2631_v1, %v172_v16 }
  0x8f   :  { %3536 = vst [vmem:[#allocation11_spill] sm:$0xff] %v2677_v26  ;;  %v310_v31 = vmul.f32 -317.52, %v246_v24  ;;  %v2707_v39 = vsub.f32 %v2637_v3, %v172_v16  ;;  %v228_v40 = vsub.f32 %v2611_v53, %v172_v16  ;;  %v162_v41 = vpop.permute.xlu1 %161  ;;  %v2712_v43 = vsub.f32 %v2639_v5, %v172_v16  ;;  %v157_v59 = vpop.permute.xlu0 %156 }
  0x90   :  { %3537 = vst [vmem:[#allocation12_spill] sm:$0xff] %v2683_v29  ;;  %v2699_v36 = vmul.f32 %v308_v27, %v244_v20  ;;  %v2715_v44 = vsub.f32 %v2641_v6, %v172_v16  ;;  %v230_v46 = vsub.f32 %v2613_v54, %v172_v16  ;;  %v2721_v49 = vsub.f32 %v2616_v56, %v172_v16 }
  0x91   :  { %v2701_v37 = vmul.f32 %v310_v31, %v246_v24  ;;  %v292_v50 = vmul.f32 -317.52, %v228_v40  ;;  %v2724_v51 = vsub.f32 %v2621_v60, %v172_v16  ;;  %v2727_v57 = vsub.f32 %v2631_v1, %v162_v41 }
  0x92   :  { %v294_v52 = vmul.f32 -317.52, %v230_v46  ;;  %v212_v58 = vsub.f32 %v2611_v53, %v162_v41  ;;  %v2734_v0 = vsub.f32 %v2637_v3, %v162_v41  ;;  %v214_v8 = vsub.f32 %v2613_v54, %v162_v41 }
  0x93   :  { %3538 = vst [vmem:[#allocation13_spill] sm:$0xff] %v2724_v51  ;;  %v2731_v63 = vmul.f32 %v292_v50, %v228_v40  ;;  %v2740_v10 = vsub.f32 %v2639_v5, %v162_v41  ;;  %v2743_v14 = vsub.f32 %v2641_v6, %v162_v41  ;;  %v2746_v19 = vsub.f32 %v2616_v56, %v162_v41  ;;  %v152_v50 = vpop.permute.xlu1 %151  ;;  %v147_v45 = vpop.permute.xlu0 %146 }
  0x94   :  { %v2737_v9 = vmul.f32 %v294_v52, %v230_v46  ;;  %v276_v16 = vmul.f32 -317.52, %v212_v58  ;;  %v2749_v20 = vsub.f32 %v2621_v60, %v162_v41  ;;  %v278_v23 = vmul.f32 -317.52, %v214_v8 }
  0x95   :  { %3539 = vst [vmem:[#allocation14_spill] sm:$0xff] %v2731_v63  ;;  %3541 = vst [vmem:[#allocation16_spill] sm:$0xff] %v2746_v19  ;;  %v204_v24 = vsub.f32 %v2611_v53, %v157_v59  ;;  %v2755_v31 = vsub.f32 %v2631_v1, %v157_v59  ;;  %v2758_v40 = vsub.f32 %v2637_v3, %v157_v59 }
  0x96   :  { %3540 = vst [vmem:[#allocation15_spill] sm:$0xff] %v2737_v9  ;;  %3542 = vst [vmem:[#allocation17_spill] sm:$0xff] %v2749_v20  ;;  %v2752_v27 = vmul.f32 %v276_v16, %v212_v58  ;;  %v206_v46 = vsub.f32 %v2613_v54, %v157_v59  ;;  %v2762_v55 = vmul.f32 %v278_v23, %v214_v8 }
  0x97   :  { %v2765_v41 = vsub.f32 %v2639_v5, %v157_v59  ;;  %v268_v4 = vmul.f32 -317.52, %v204_v24  ;;  %v2769_v16 = vsub.f32 %v2641_v6, %v157_v59  ;;  %v2772_v47 = vsub.f32 %v2616_v56, %v157_v59 }
  0x98   :  { %3543 = vst [vmem:[#allocation18_spill] sm:$0xff] %v2752_v27  ;;  %3544 = vst [vmem:[#allocation19_spill] sm:$0xff] %v2762_v55  ;;  %v270_v42 = vmul.f32 -317.52, %v206_v46  ;;  %v2775_v62 = vsub.f32 %v2621_v60, %v157_v59  ;;  %v2780_v8 = vsub.f32 %v2631_v1, %v152_v50  ;;  %v196_v23 = vsub.f32 %v2611_v53, %v152_v50 }
  0x99   :  { %3545 = vst [vmem:[#allocation20_spill] sm:$0xff] %v2772_v47  ;;  %v2777_v34 = vmul.f32 %v268_v4, %v204_v24  ;;  %v2787_v48 = vsub.f32 %v2637_v3, %v152_v50  ;;  %v198_v33 = vsub.f32 %v2613_v54, %v152_v50  ;;  %v2792_v4 = vsub.f32 %v2639_v5, %v152_v50 }
  0x9a   :  { %3546 = vst [vmem:[#allocation21_spill] sm:$0xff] %v2775_v62  ;;  %v2784_v58 = vmul.f32 %v270_v42, %v206_v46  ;;  %v2795_v24 = vsub.f32 %v2641_v6, %v152_v50  ;;  %v260_v20 = vmul.f32 -317.52, %v196_v23  ;;  %v2799_v42 = vsub.f32 %v2616_v56, %v152_v50 }
  0x9b   :  { %3547 = vst [vmem:[#allocation22_spill] sm:$0xff] %v2777_v34  ;;  %v2802_v46 = vsub.f32 %v2621_v60, %v152_v50  ;;  %v262_v52 = vmul.f32 -317.52, %v198_v33  ;;  %v2806_v59 = vsub.f32 %v2631_v1, %v147_v45  ;;  %v2809_v55 = vsub.f32 %v2637_v3, %v147_v45 }
  0x9c   :  { %3548 = vst [vmem:[#allocation23_spill] sm:$0xff] %v2784_v58  ;;  %3549 = vst [vmem:[#allocation24_spill] sm:$0xff] %v2799_v42  ;;  %v188_v19 = vsub.f32 %v2611_v53, %v147_v45  ;;  %v2813_v47 = vsub.f32 %v2639_v5, %v147_v45  ;;  %v2816_v62 = vsub.f32 %v2641_v6, %v147_v45 }
  0x9d   :  { %3550 = vst [vmem:[#allocation25_spill] sm:$0xff] %v2802_v46  ;;  %v241_v50 = vsub.f32 %v2637_v3, %v2658_v15  ;;  %v297_v46 = vmul.f32 -317.52, %v2681_v28  ;;  %v2821_v27 = vmul.f32 %v260_v20, %v196_v23  ;;  %v2824_v42 = vsub.f32 %v2616_v56, %v147_v45 }
  0x9e   :  { %v2827_v58 = vsub.f32 %v2613_v54, %v147_v45  ;;  %v243_v53 = vsub.f32 %v2641_v6, %v2658_v15  ;;  %v2831_v34 = vmul.f32 %v262_v52, %v198_v33  ;;  %v299_v3 = vmul.f32 -317.52, %v2691_v32 }
  0x9f   :  { %3551 = vst [vmem:[#allocation26_spill] sm:$0xff] %v2824_v42  ;;  %v305_v9 = vmul.f32 -317.52, %v241_v50  ;;  %v361_v29 = vmul.f32 %v297_v46, %v2681_v28  ;;  %v2836_v63 = vsub.f32 %v2621_v60, %v147_v45  ;;  %v252_v20 = vmul.f32 -317.52, %v188_v19 }
  0xa0   :  { %3552 = vst [vmem:[#allocation27_spill] sm:$0xff] %v2831_v34  ;;  %v307_v23 = vmul.f32 -317.52, %v243_v53  ;;  %v232_v56 = vsub.f32 %v2631_v1, %v2623_v61  ;;  %v363_v26 = vmul.f32 %v299_v3, %v2691_v32  ;;  %v240_v6 = vsub.f32 %v2631_v1, %v2658_v15 }
  0xa1   :  { %3553 = vst [vmem:[#allocation28_spill] sm:$0xff] %v2836_v63  ;;  %v369_v54 = vmul.f32 %v305_v9, %v241_v50  ;;  %v425_v42 = vmin.f32 %v361_v29, 0.0  ;;  %v388_v33 = vmin.f32 %v2821_v27, 0.0  ;;  %v2845_v28 = vmul.f32 -317.52, %v2827_v58 }
  0xa2   :  { %v371_v52 = vmul.f32 %v307_v23, %v243_v53  ;;  %v296_v45 = vmul.f32 -317.52, %v232_v56  ;;  %v427_v34 = vmin.f32 %v363_v26, 0.0  ;;  %v304_v63 = vmul.f32 -317.52, %v240_v6 }
  0xa3   :  { %v433_v60 = vmin.f32 %v369_v54, 0.0  ;;  %v538_v46 = vmul.f32 1.442695, %v425_v42  ;;  %v234_v29 = vsub.f32 %v2639_v5, %v2623_v61  ;;  %v242_v32 = vsub.f32 %v2639_v5, %v2658_v15 }
  0xa4   :  { %v435_v51 = vmin.f32 %v371_v52, 0.0  ;;  %v360_v25 = vmul.f32 %v296_v45, %v232_v56  ;;  %v2851_v1 = vmul.f32 %v252_v20, %v188_v19  ;;  %v542_v50 = vmul.f32 1.442695, %v427_v34 }
  0xa5   :  { %v554_v9 = vmul.f32 1.442695, %v433_v60  ;;  %v368_v3 = vmul.f32 %v304_v63, %v240_v6  ;;  %2044 = vpow2.f32 %v538_v46  ;;  %v298_v54 = vmul.f32 -317.52, %v234_v29 }
  0xa6   :  { %v558_v53 = vmul.f32 1.442695, %v435_v51  ;;  %v424_v23 = vmin.f32 %v360_v25, 0.0  ;;  %v306_v42 = vmul.f32 -317.52, %v242_v32 }
  0xa7   :  { %2046 = vpow2.f32 %v554_v9  ;;  %v432_v26 = vmin.f32 %v368_v3, 0.0  ;;  %v281_v56 = vmul.f32 -317.52, %v2652_v12  ;;  %v362_v61 = vmul.f32 %v298_v54, %v234_v29 }
  0xa8   :  { %2048 = vpow2.f32 %v542_v50  ;;  %v536_v52 = vmul.f32 1.442695, %v424_v23  ;;  %v289_v45 = vmul.f32 -317.52, %v2707_v39  ;;  %v370_v15 = vmul.f32 %v306_v42, %v242_v32 }
  0xa9   :  { %2050 = vpow2.f32 %v558_v53  ;;  %v552_v5 = vmul.f32 1.442695, %v432_v26  ;;  %v345_v34 = vmul.f32 %v281_v56, %v2652_v12  ;;  %v426_v63 = vmin.f32 %v362_v61, 0.0 }
  0xaa   :  { %2052 = vpow2.f32 %v536_v52  ;;  %v353_v25 = vmul.f32 %v289_v45, %v2707_v39  ;;  %v283_v51 = vmul.f32 -317.52, %v2667_v21  ;;  %v434_v19 = vmin.f32 %v370_v15, 0.0 }
  0xab   :  { %2054 = vpow2.f32 %v552_v5  ;;  %v409_v20 = vmin.f32 %v345_v34, 0.0  ;;  %v291_v6 = vmul.f32 -317.52, %v2715_v44  ;;  %v540_v60 = vmul.f32 1.442695, %v426_v63 }
  0xac   :  { %v417_v46 = vmin.f32 %v353_v25, 0.0  ;;  %v347_v29 = vmul.f32 %v283_v51, %v2667_v21  ;;  %v280_v9 = vmul.f32 -317.52, %v2649_v11  ;;  %v556_v32 = vmul.f32 1.442695, %v434_v19 }
  0xad   :  { %v506_v50 = vmul.f32 1.442695, %v409_v20  ;;  %v355_v12 = vmul.f32 %v291_v6, %v2715_v44  ;;  %v288_v3 = vmul.f32 -317.52, %v2704_v38  ;;  %2056 = vpow2.f32 %v540_v60 }
  0xae   :  { %v522_v39 = vmul.f32 1.442695, %v417_v46  ;;  %v411_v53 = vmin.f32 %v347_v29, 0.0  ;;  %v344_v23 = vmul.f32 %v280_v9, %v2649_v11  ;;  %2058 = vpow2.f32 %v556_v32 }
  0xaf   :  { %v419_v54 = vmin.f32 %v355_v12, 0.0  ;;  %v352_v26 = vmul.f32 %v288_v3, %v2704_v38  ;;  %v282_v42 = vmul.f32 -317.52, %v2655_v13  ;;  %2060 = vpow2.f32 %v506_v50 }
  0xb0   :  { %v510_v21 = vmul.f32 1.442695, %v411_v53  ;;  %v408_v56 = vmin.f32 %v344_v23, 0.0  ;;  %v290_v52 = vmul.f32 -317.52, %v2712_v43  ;;  %2062 = vpow2.f32 %v522_v39 }
  0xb1   :  { %v526_v44 = vmul.f32 1.442695, %v419_v54  ;;  %v416_v61 = vmin.f32 %v352_v26, 0.0  ;;  %v346_v45 = vmul.f32 %v282_v42, %v2655_v13  ;;  %v265_v15 = vmul.f32 -317.52, %v2758_v40 }
  0xb2   :  { %2064 = vpow2.f32 %v510_v21  ;;  %v504_v5 = vmul.f32 1.442695, %v408_v56  ;;  %v354_v11 = vmul.f32 %v290_v52, %v2712_v43  ;;  %v2045_v34 = vpop.eup %2044  ;;  %v273_v25 = vmul.f32 -317.52, %v2734_v0 }
  0xb3   :  { %2066 = vpow2.f32 %v526_v44  ;;  %v520_v38 = vmul.f32 1.442695, %v416_v61  ;;  %v410_v63 = vmin.f32 %v346_v45, 0.0  ;;  %v329_v20 = vmul.f32 %v265_v15, %v2758_v40 }
  0xb4   :  { %v2047_v51 = vpop.eup %2046  ;;  %2068 = vpow2.f32 %v504_v5  ;;  %v418_v19 = vmin.f32 %v354_v11, 0.0  ;;  %v267_v6 = vmul.f32 -317.52, %v2769_v16  ;;  %v337_v43 = vmul.f32 %v273_v25, %v2734_v0 }
  0xb5   :  { %v2049_v13 = vpop.eup %2048  ;;  %v593_v60 = vpack.c.bf16 %v2047_v51, %v2045_v34  ;;  %2070 = vpow2.f32 %v520_v38  ;;  %v508_v46 = vmul.f32 1.442695, %v410_v63  ;;  %v393_v32 = vmin.f32 %v329_v20, 0.0 }
  0xb6   :  { %v2051_v29 = vpop.eup %2050  ;;  %v524_v9 = vmul.f32 1.442695, %v418_v19  ;;  %v275_v50 = vmul.f32 -317.52, %v2743_v14  ;;  %v331_v12 = vmul.f32 %v267_v6, %v2769_v16  ;;  %v401_v40 = vmin.f32 %v337_v43, 0.0 }
  0xb7   :  { %v2053_v3 = vpop.eup %2052  ;;  %697 = vmatprep.subr.bf16.mxu0 %v593_v60  ;;  %v595_v39 = vpack.c.bf16 %v2051_v29, %v2049_v13  ;;  %2072 = vpow2.f32 %v508_v46  ;;  %v264_v53 = vmul.f32 -317.52, %v2755_v31  ;;  %v474_v54 = vmul.f32 1.442695, %v393_v32 }
  0xb8   :  { %v2055_v23 = vpop.eup %2054  ;;  %2074 = vpow2.f32 %v524_v9  ;;  %v339_v26 = vmul.f32 %v275_v50, %v2743_v14  ;;  %v395_v0 = vmin.f32 %v331_v12, 0.0  ;;  %v490_v21 = vmul.f32 1.442695, %v401_v40 }
  0xb9   :  { %770 = vmatprep.subr.bf16.mxu1 %v595_v39  ;;  %v592_v42 = vpack.c.bf16 %v2055_v23, %v2053_v3  ;;  %v272_v56 = vmul.f32 -317.52, %v2727_v57  ;;  %v328_v16 = vmul.f32 %v264_v53, %v2755_v31  ;;  %2076 = vpow2.f32 %v474_v54 }
  0xba   :  { %v403_v52 = vmin.f32 %v339_v26, 0.0  ;;  %v478_v44 = vmul.f32 1.442695, %v395_v0  ;;  %v266_v61 = vmul.f32 -317.52, %v2765_v41  ;;  %v2057_v45 = vpop.eup %2056  ;;  %2078 = vpow2.f32 %v490_v21 }
  0xbb   :  { %698 = vmatpush1.bf16.msra.mxu0 %v592_v42  ;;  %v336_v5 = vmul.f32 %v272_v56, %v2727_v57  ;;  %v392_v11 = vmin.f32 %v328_v16, 0.0  ;;  %v274_v14 = vmul.f32 -317.52, %v2740_v10  ;;  %v2059_v15 = vpop.eup %2058  ;;  %v249_v31 = vmul.f32 -317.52, %v2809_v55 }
  0xbc   :  { %2080 = vpow2.f32 %v478_v44  ;;  %v494_v34 = vmul.f32 1.442695, %v403_v52  ;;  %v330_v38 = vmul.f32 %v266_v61, %v2765_v41  ;;  %v2061_v63 = vpop.eup %2060  ;;  %v594_v25 = vpack.c.bf16 %v2059_v15, %v2057_v45 }
  0xbd   :  { %v400_v51 = vmin.f32 %v336_v5, 0.0  ;;  %v472_v19 = vmul.f32 1.442695, %v392_v11  ;;  %v338_v20 = vmul.f32 %v274_v14, %v2740_v10  ;;  %v2063_v6 = vpop.eup %2062  ;;  %v257_v57 = vmul.f32 -317.52, %v2787_v48 }
  0xbe   :  { %2082 = vpow2.f32 %v494_v34  ;;  %v394_v13 = vmin.f32 %v330_v38, 0.0  ;;  %v313_v60 = vmul.f32 %v249_v31, %v2809_v55  ;;  %771 = vmatpush1.bf16.msra.mxu1 %v594_v25  ;;  %v585_v43 = vpack.c.bf16 %v2063_v6, %v2061_v63 }
  0xbf   :  { %v2065_v46 = vpop.eup %2064  ;;  %2084 = vpow2.f32 %v472_v19  ;;  %v488_v41 = vmul.f32 1.442695, %v400_v51  ;;  %v402_v29 = vmin.f32 %v338_v20, 0.0  ;;  %v321_v50 = vmul.f32 %v257_v57, %v2787_v48 }
  0xc0   :  { %v2067_v9 = vpop.eup %2066  ;;  %v476_v32 = vmul.f32 1.442695, %v394_v13  ;;  %v377_v12 = vmin.f32 %v313_v60, 0.0  ;;  %v251_v10 = vmul.f32 -317.52, %v2816_v62  ;;  %699 = vmatprep.subr.bf16.mxu0 %v585_v43 }
  0xc1   :  { %v2069_v3 = vpop.eup %2068  ;;  %v587_v39 = vpack.c.bf16 %v2067_v9, %v2065_v46  ;;  %2086 = vpow2.f32 %v488_v41  ;;  %v492_v40 = vmul.f32 1.442695, %v402_v29  ;;  %v259_v55 = vmul.f32 -317.52, %v2795_v24 }
  0xc2   :  { %v2071_v53 = vpop.eup %2070  ;;  %2088 = vpow2.f32 %v476_v32  ;;  %v385_v23 = vmin.f32 %v321_v50, 0.0  ;;  %v442_v54 = vmul.f32 1.442695, %v377_v12  ;;  %v315_v26 = vmul.f32 %v251_v10, %v2816_v62 }
  0xc3   :  { %772 = vmatprep.subr.bf16.mxu1 %v587_v39  ;;  %v584_v0 = vpack.c.bf16 %v2071_v53, %v2069_v3  ;;  %2090 = vpow2.f32 %v492_v40  ;;  %v323_v48 = vmul.f32 %v259_v55, %v2795_v24  ;;  %v248_v42 = vmul.f32 -317.52, %v2806_v59 }
  0xc4   :  { %v2073_v21 = vpop.eup %2072  ;;  %2092 = vpow2.f32 %v442_v54  ;;  %v458_v56 = vmul.f32 1.442695, %v385_v23  ;;  %v379_v16 = vmin.f32 %v315_v26, 0.0  ;;  %v256_v52 = vmul.f32 -317.52, %v2780_v8 }
  0xc5   :  { %v2075_v44 = vpop.eup %2074  ;;  %700 = vmatpush1.bf16.msra.mxu0 %v584_v0  ;;  %v387_v61 = vmin.f32 %v323_v48, 0.0  ;;  %v312_v45 = vmul.f32 %v248_v42, %v2806_v59  ;;  %v250_v62 = vmul.f32 -317.52, %v2813_v47  ;;  %v258_v5 = vmul.f32 -317.52, %v2792_v4 }
  0xc6   :  { %v586_v11 = vpack.c.bf16 %v2075_v44, %v2073_v21  ;;  %2094 = vpow2.f32 %v458_v56  ;;  %v446_v24 = vmul.f32 1.442695, %v379_v16  ;;  %v320_v14 = vmul.f32 %v256_v52, %v2780_v8  ;;  %v2077_v15 = vpop.eup %2076 }
  0xc7   :  { %v462_v34 = vmul.f32 1.442695, %v387_v61  ;;  %v376_v38 = vmin.f32 %v312_v45, 0.0  ;;  %v314_v31 = vmul.f32 %v250_v62, %v2813_v47  ;;  %v322_v63 = vmul.f32 %v258_v5, %v2792_v4  ;;  %v2079_v25 = vpop.eup %2078  ;;  %v3558_v62 = vld [vmem:[#allocation10_spill] sm:$0xff] }
  0xc8   :  { %773 = vmatpush1.bf16.msra.mxu1 %v586_v11  ;;  %2096 = vpow2.f32 %v446_v24  ;;  %v384_v59 = vmin.f32 %v320_v14, 0.0  ;;  %v301_v51 = vmul.f32 -317.52, %v2635_v2  ;;  %v309_v19 = vmul.f32 -317.52, %v2687_v30 }
  0xc9   :  { %v2081_v20 = vpop.eup %2080  ;;  %v577_v6 = vpack.c.bf16 %v2079_v25, %v2077_v15  ;;  %2098 = vpow2.f32 %v462_v34  ;;  %v440_v13 = vmul.f32 1.442695, %v376_v38  ;;  %v378_v8 = vmin.f32 %v314_v31, 0.0  ;;  %v3562_v15 = vld [vmem:[#allocation14_spill] sm:$0xff] }
  0xca   :  { %v456_v57 = vmul.f32 1.442695, %v384_v59  ;;  %v386_v60 = vmin.f32 %v322_v63, 0.0  ;;  %v365_v46 = vmul.f32 %v301_v51, %v2635_v2  ;;  %v373_v47 = vmul.f32 %v309_v19, %v2687_v30 }
  0xcb   :  { %v2083_v4 = vpop.eup %2082  ;;  %701 = vmatprep.subr.bf16.mxu0 %v577_v6  ;;  %2100 = vpow2.f32 %v440_v13  ;;  %v444_v43 = vmul.f32 1.442695, %v378_v8  ;;  %v303_v41 = vmul.f32 -317.52, %v2645_v7  ;;  %v311_v29 = vmul.f32 -317.52, %v2697_v35 }
  0xcc   :  { %v2085_v9 = vpop.eup %2084  ;;  %v579_v32 = vpack.c.bf16 %v2083_v4, %v2081_v20  ;;  %2102 = vpow2.f32 %v456_v57  ;;  %v460_v50 = vmul.f32 1.442695, %v386_v60  ;;  %v429_v12 = vmin.f32 %v365_v46, 0.0  ;;  %v3564_v20 = vld [vmem:[#allocation12_spill] sm:$0xff]  ;;  %v3566_v46 = vld [vmem:[#allocation15_spill] sm:$0xff] }
  0xcd   :  { %2104 = vpow2.f32 %v444_v43  ;;  %v437_v10 = vmin.f32 %v373_v47, 0.0  ;;  %v367_v3 = vmul.f32 %v303_v41, %v2645_v7  ;;  %v375_v2 = vmul.f32 %v311_v29, %v2697_v35 }
  0xce   :  { %v2087_v30 = vpop.eup %2086  ;;  %v2911_v39 = vmul.f32 %v2845_v28, %v2827_v58  ;;  %774 = vmatprep.subr.bf16.mxu1 %v579_v32  ;;  %2106 = vpow2.f32 %v460_v50  ;;  %v546_v40 = vmul.f32 1.442695, %v429_v12  ;;  %v3554_v55 = vmin.f32 %v2660_v17, 0.0  ;;  %v3568_v32 = vld [vmem:[#allocation20_spill] sm:$0xff] }
  0xcf   :  { %v2089_v23 = vpop.eup %2088  ;;  %v576_v54 = vpack.c.bf16 %v2087_v30, %v2085_v9  ;;  %v562_v26 = vmul.f32 1.442695, %v437_v10  ;;  %v431_v0 = vmin.f32 %v367_v3, 0.0  ;;  %v439_v48 = vmin.f32 %v375_v2, 0.0  ;;  %v3569_v2 = vld [vmem:[#allocation16_spill] sm:$0xff] }
  0xd0   :  { %v544_v53 = vmul.f32 1.442695, %v3554_v55  ;;  %v2091_v42 = vpop.eup %2090  ;;  %2108 = vpow2.f32 %v546_v40  ;;  %v3555_v7 = vmin.f32 %v2699_v36, 0.0  ;;  %v3556_v21 = vmin.f32 %v2662_v18, 0.0  ;;  %v3559_v18 = vld [vmem:[#allocation13_spill] sm:$0xff] }
  0xd1   :  { %v3557_v28 = vmin.f32 %v2701_v37, 0.0  ;;  %v2093_v16 = vpop.eup %2092  ;;  %702 = vmatpush1.bf16.msra.mxu0 %v576_v54  ;;  %v578_v17 = vpack.c.bf16 %v2091_v42, %v2089_v23  ;;  %2110 = vpow2.f32 %v562_v26  ;;  %v550_v52 = vmul.f32 1.442695, %v431_v0  ;;  %v3560_v37 = vld [vmem:[#allocation11_spill] sm:$0xff]  ;;  %v3570_v23 = vld [vmem:[#allocation21_spill] sm:$0xff] }
  0xd2   :  { %v560_v35 = vmul.f32 1.442695, %v3555_v7  ;;  %v548_v58 = vmul.f32 1.442695, %v3556_v21  ;;  %v566_v44 = vmul.f32 1.442695, %v439_v48  ;;  %2112 = vpow2.f32 %v544_v53 }
  0xd3   :  { %v564_v56 = vmul.f32 1.442695, %v3557_v28  ;;  %v285_v61 = vmul.f32 -317.52, %v2670_v22  ;;  %v293_v45 = vmul.f32 -317.52, %v2721_v49  ;;  %v2095_v5 = vpop.eup %2094  ;;  %775 = vmatpush1.bf16.msra.mxu1 %v578_v17  ;;  %2114 = vpow2.f32 %v550_v52 }
  0xd4   :  { %v287_v36 = vmul.f32 -317.52, %v3558_v62  ;;  %v295_v11 = vmul.f32 -317.52, %v3559_v18  ;;  %v3561_v24 = vmin.f32 %v3560_v37, 0.0  ;;  %v3563_v34 = vmin.f32 %v3562_v15, 0.0 }
  0xd5   :  { %v569_v31 = vpack.c.bf16 %v2095_v5, %v2093_v16  ;;  %2116 = vpow2.f32 %v566_v44  ;;  %v349_v63 = vmul.f32 %v285_v61, %v2670_v22  ;;  %v357_v25 = vmul.f32 %v293_v45, %v2721_v49  ;;  %v2097_v59 = vpop.eup %2096  ;;  %v2944_v0 = vld [vmem:[%s3504_s3] sm:$0xff]   ;;  %v3571_v42 = vld [vmem:[#allocation17_spill] sm:$0xff]  ;;  %v3574_v61 = vld [vmem:[#allocation18_spill] sm:$0xff] }
  0xd6   :  { %v512_v14 = vmul.f32 1.442695, %v3561_v24  ;;  %v528_v38 = vmul.f32 1.442695, %v3563_v34  ;;  %2118 = vpow2.f32 %v560_v35  ;;  %v351_v51 = vmul.f32 %v287_v36, %v3558_v62  ;;  %v2099_v8 = vpop.eup %2098  ;;  %v3572_v35 = vld [vmem:[#allocation22_spill] sm:$0xff] }
  0xd7   :  { %v359_v19 = vmul.f32 %v295_v11, %v3559_v18  ;;  %v3565_v6 = vmin.f32 %v3564_v20, 0.0  ;;  %703 = vmatprep.subr.bf16.mxu0 %v569_v31  ;;  %2120 = vpow2.f32 %v548_v58  ;;  %v413_v57 = vmin.f32 %v349_v63, 0.0  ;;  %v3576_v11 = vld [vmem:[#allocation23_spill] sm:$0xff]  ;;  %v3581_v20 = vld [vmem:[#allocation26_spill] sm:$0xff] }
  0xd8   :  { %v421_v60 = vmin.f32 %v357_v25, 0.0  ;;  %v3567_v47 = vmin.f32 %v3566_v46, 0.0  ;;  %v571_v22 = vpack.c.bf16 %v2099_v8, %v2097_v59  ;;  %2122 = vpow2.f32 %v564_v56  ;;  %v2101_v41 = vpop.eup %2100  ;;  %v3579_v59 = vld [vmem:[#allocation19_spill] sm:$0xff]  ;;  %v3583_v46 = vld [vmem:[#allocation28_spill] sm:$0xff] }
  0xd9   :  { %v516_v13 = vmul.f32 1.442695, %v3565_v6  ;;  %v415_v49 = vmin.f32 %v351_v51, 0.0  ;;  %v423_v43 = vmin.f32 %v359_v19, 0.0  ;;  %v514_v29 = vmul.f32 1.442695, %v413_v57  ;;  %v2103_v12 = vpop.eup %2102 }
  0xda   :  { %v532_v4 = vmul.f32 1.442695, %v3567_v47  ;;  %v530_v9 = vmul.f32 1.442695, %v421_v60  ;;  %2124 = vpow2.f32 %v512_v14  ;;  %v269_v50 = vmul.f32 -317.52, %v3568_v32  ;;  %776 = vmatprep.subr.bf16.mxu1 %v571_v22  ;;  %v2105_v40 = vpop.eup %2104 }
  0xdb   :  { %v518_v10 = vmul.f32 1.442695, %v415_v49  ;;  %v534_v3 = vmul.f32 1.442695, %v423_v43  ;;  %2126 = vpow2.f32 %v528_v38  ;;  %v277_v30 = vmul.f32 -317.52, %v3569_v2  ;;  %v2107_v26 = vpop.eup %2106 }
  0xdc   :  { %v568_v55 = vpack.c.bf16 %v2103_v12, %v2101_v41  ;;  %2128 = vpow2.f32 %v514_v29  ;;  %v333_v53 = vmul.f32 %v269_v50, %v3568_v32  ;;  %v271_v54 = vmul.f32 -317.52, %v3570_v23  ;;  %v3582_v57 = vld [vmem:[#allocation24_spill] sm:$0xff]  ;;  %v3584_v43 = vld [vmem:[#allocation25_spill] sm:$0xff] }
  0xdd   :  { %2130 = vpow2.f32 %v530_v9  ;;  %v341_v48 = vmul.f32 %v277_v30, %v3569_v2  ;;  %v279_v7 = vmul.f32 -317.52, %v3571_v42  ;;  %v3573_v21 = vmin.f32 %v3572_v35, 0.0  ;;  %v2109_v17 = vpop.eup %2108  ;;  %v2972_v32 = vld [vmem:[%s3504_s3 + $0x8] sm:$0xff]   ;;  %v3585_v35 = vld [vmem:[#allocation27_spill] sm:$0xff] }
  0xde   :  { %704 = vmatpush1.bf16.msra.mxu0 %v568_v55  ;;  %v570_v28 = vpack.c.bf16 %v2107_v26, %v2105_v40  ;;  %2132 = vpow2.f32 %v518_v10  ;;  %v397_v56 = vmin.f32 %v333_v53, 0.0  ;;  %v335_v16 = vmul.f32 %v271_v54, %v3570_v23  ;;  %v2111_v36 = vpop.eup %2110 }
  0xdf   :  { %v480_v58 = vmul.f32 1.442695, %v3573_v21  ;;  %2134 = vpow2.f32 %v534_v3  ;;  %v405_v52 = vmin.f32 %v341_v48, 0.0  ;;  %v343_v44 = vmul.f32 %v279_v7, %v3571_v42  ;;  %v2113_v14 = vpop.eup %2112 }
  0xe0   :  { %v3575_v45 = vmin.f32 %v3574_v61, 0.0  ;;  %777 = vmatpush1.bf16.msra.mxu1 %v570_v28  ;;  %2136 = vpow2.f32 %v516_v13  ;;  %v482_v5 = vmul.f32 1.442695, %v397_v56  ;;  %v399_v18 = vmin.f32 %v335_v16, 0.0  ;;  %v2115_v31 = vpop.eup %2114 }
  0xe1   :  { %v3577_v37 = vmin.f32 %v3576_v11, 0.0  ;;  %v597_v15 = vpack.c.bf16 %v2111_v36, %v2109_v17  ;;  %1985 = vmatmul.mubr.msk.bf16.vlgmr.msra.gmra.mxu0 %vm676_vm2, %v2944_v0  ;;  %2138 = vpow2.f32 %v532_v4  ;;  %v498_v34 = vmul.f32 1.442695, %v405_v52 }
  0xe2   :  { %v496_v62 = vmul.f32 1.442695, %v3575_v45  ;;  %v407_v38 = vmin.f32 %v343_v44, 0.0  ;;  %2140 = vpow2.f32 %v482_v5  ;;  %v486_v63 = vmul.f32 1.442695, %v399_v18  ;;  %v2117_v13 = vpop.eup %2116  ;;  %v2036_v18 = vld [vmem:[%s3504_s3 + $0x10] sm:$0xff]  }
  0xe3   :  { %v484_v24 = vmul.f32 1.442695, %v3577_v37  ;;  %v3578_v25 = vmov 0   ;;  %v3580_v51 = vmin.f32 %v3579_v59, 0.0  ;;  %v253_v6 = vmul.f32 -317.52, %v3581_v20  ;;  %843 = vmatprep.subr.bf16.mxu0 %v597_v15  ;;  %1989 = vmatmul.mubr.msk.bf16.vlgmr.msra.gmra.mxu1 %vm676_vm2, %v2944_v0  ;;  %v2119_v4 = vpop.eup %2118 }
  0xe4   :  { %731 = vmatprep.mubr.bf16.mxu0 %v3578_v25  ;;  %2142 = vpow2.f32 %v498_v34  ;;  %v502_v8 = vmul.f32 1.442695, %v407_v38  ;;  %v261_v60 = vmul.f32 -317.52, %v3582_v57  ;;  %v255_v47 = vmul.f32 -317.52, %v3583_v46  ;;  %804 = vmatprep.mubr.bf16.mxu1 %v3578_v25  ;;  %v2121_v29 = vpop.eup %2120 }
  0xe5   :  { %v500_v19 = vmul.f32 1.442695, %v3580_v51  ;;  %v599_v22 = vpack.c.bf16 %v2117_v13, %v2115_v31  ;;  %2144 = vpow2.f32 %v486_v63  ;;  %v317_v49 = vmul.f32 %v253_v6, %v3581_v20  ;;  %v2123_v10 = vpop.eup %2122  ;;  %v2037_v51 = vld [vmem:[%s3504_s3 + $0x18] sm:$0xff]  }
  0xe6   :  { %v263_v41 = vmul.f32 -317.52, %v3584_v43  ;;  %v596_v9 = vpack.c.bf16 %v2119_v4, %v2113_v14  ;;  %2146 = vpow2.f32 %v502_v8  ;;  %v325_v50 = vmul.f32 %v261_v60, %v3582_v57 }
  0xe7   :  { %v319_v12 = vmul.f32 %v255_v47, %v3583_v46  ;;  %v380_v3 = vmin.f32 %v2851_v1, 0.0  ;;  %916 = vmatprep.subr.bf16.mxu1 %v599_v22  ;;  %2148 = vpow2.f32 %v480_v58  ;;  %v381_v2 = vmin.f32 %v317_v49, 0.0  ;;  %v2125_v40 = vpop.eup %2124 }
  0xe8   :  { %v327_v30 = vmul.f32 %v263_v41, %v3584_v43  ;;  %844 = vmatpush1.bf16.msra.mxu0 %v596_v9  ;;  %v598_v55 = vpack.c.bf16 %v2123_v10, %v2121_v29  ;;  %2150 = vpow2.f32 %v496_v62  ;;  %v389_v53 = vmin.f32 %v325_v50, 0.0  ;;  %v2127_v54 = vpop.eup %2126  ;;  %v3024_v29 = vpop.permute.xlu1 %653 }
  0xe9   :  { %v383_v23 = vmin.f32 %v319_v12, 0.0  ;;  %v382_v26 = vmin.f32 %v2911_v39, 0.0  ;;  %2152 = vpow2.f32 %v484_v24  ;;  %v450_v48 = vmul.f32 1.442695, %v381_v2  ;;  %v2129_v7 = vpop.eup %2128  ;;  %1986 = vmatmul.mubr.msk.bf16.gmra.mxu0 %vm676_vm2, %v2972_v32 }
  0xea   :  { %v391_v42 = vmin.f32 %v327_v30, 0.0  ;;  %v390_v1 = vmin.f32 %v3585_v35, 0.0  ;;  %917 = vmatpush1.bf16.msra.mxu1 %v598_v55  ;;  %2154 = vpow2.f32 %v500_v19  ;;  %v466_v21 = vmul.f32 1.442695, %v389_v53  ;;  %v2131_v28 = vpop.eup %2130  ;;  %741 = vmatprep.mubr.bf16.mxu0 %v3578_v25 }
  0xeb   :  { %v454_v58 = vmul.f32 1.442695, %v383_v23  ;;  %2156 = vpow2.f32 %v450_v48  ;;  %v448_v16 = vmul.f32 1.442695, %v380_v3  ;;  %v2133_v39 = vpop.eup %2132  ;;  %v589_v17 = vpack.c.bf16 %v2131_v28, %v2129_v7  ;;  %1990 = vmatmul.mubr.msk.bf16.gmra.mxu1 %vm676_vm2, %v2972_v32 }
  0xec   :  { %v470_v56 = vmul.f32 1.442695, %v391_v42  ;;  %2158 = vpow2.f32 %v466_v21  ;;  %v464_v52 = vmul.f32 1.442695, %v388_v33  ;;  %v2135_v44 = vpop.eup %2134  ;;  %v588_v61 = vpack.c.bf16 %v2127_v54, %v2125_v40  ;;  %814 = vmatprep.mubr.bf16.mxu1 %v3578_v25  ;;  %v3030_v50 = vpop.permute.xlu1 %643 }
  0xed   :  { %2160 = vpow2.f32 %v454_v58  ;;  %v452_v45 = vmul.f32 1.442695, %v382_v26  ;;  %v2137_v62 = vpop.eup %2136  ;;  %845 = vmatprep.subr.bf16.mxu0 %v589_v17  ;;  %v591_v36 = vpack.c.bf16 %v2135_v44, %v2133_v39  ;;  %v468_v5 = vmul.f32 1.442695, %v390_v1 }
  0xee   :  { %2162 = vpow2.f32 %v470_v56  ;;  %v2139_v11 = vpop.eup %2138  ;;  %846 = vmatpush1.bf16.msra.mxu0 %v588_v61 }
  0xef   :  { %2164 = vpow2.f32 %v448_v16  ;;  %v2141_v27 = vpop.eup %2140  ;;  %918 = vmatprep.subr.bf16.mxu1 %v591_v36  ;;  %v590_v33 = vpack.c.bf16 %v2139_v11, %v2137_v62 }
  0xf0   :  { %2166 = vpow2.f32 %v464_v52  ;;  %v3040_v53 = vpop.permute.xlu1 %633 }
  0xf1   :  { %v2143_v37 = vpop.eup %2142  ;;  %2168 = vpow2.f32 %v452_v45  ;;  %919 = vmatpush1.bf16.msra.mxu1 %v590_v33  ;;  %1987 = vmatmul.mubr.msk.bf16.gmra.mxu0 %vm676_vm2, %v2036_v18 }
  0xf2   :  { %v2145_v24 = vpop.eup %2144  ;;  %v581_v14 = vpack.c.bf16 %v2143_v37, %v2141_v27  ;;  %2170 = vpow2.f32 %v468_v5  ;;  %751 = vmatprep.mubr.bf16.mxu0 %v3578_v25 }
  0xf3   :  { %v2147_v15 = vpop.eup %2146  ;;  %1991 = vmatmul.mubr.msk.bf16.gmra.mxu1 %vm676_vm2, %v2036_v18 }
  0xf4   :  { %v2149_v34 = vpop.eup %2148  ;;  %847 = vmatprep.subr.bf16.mxu0 %v581_v14  ;;  %v583_v38 = vpack.c.bf16 %v2147_v15, %v2145_v24  ;;  %824 = vmatprep.mubr.bf16.mxu1 %v3578_v25  ;;  %v3050_v1 = vpop.permute.xlu1 %623 }
  0xf5   :  { %v2151_v31 = vpop.eup %2150 }
  0xf6   :  { %v2153_v63 = vpop.eup %2152  ;;  %920 = vmatprep.subr.bf16.mxu1 %v583_v38  ;;  %v580_v59 = vpack.c.bf16 %v2151_v31, %v2149_v34 }
  0xf7   :  { %v2155_v19 = vpop.eup %2154 }
  0xf8   :  { %v2157_v20 = vpop.eup %2156  ;;  %848 = vmatpush1.bf16.msra.mxu0 %v580_v59  ;;  %v582_v6 = vpack.c.bf16 %v2155_v19, %v2153_v63 }
  0xf9   :  { %v2159_v13 = vpop.eup %2158  ;;  %1988 = vmatmul.mubr.msk.bf16.gmra.mxu0 %vm676_vm2, %v2037_v51 }
  0xfa   :  { %v2161_v8 = vpop.eup %2160  ;;  %921 = vmatpush1.bf16.msra.mxu1 %v582_v6  ;;  %v573_v57 = vpack.c.bf16 %v2159_v13, %v2157_v20  ;;  %867 = vmatprep.mubr.bf16.mxu0 %v3578_v25 }
  0xfb   :  { %v2163_v60 = vpop.eup %2162  ;;  %1992 = vmatmul.mubr.msk.bf16.gmra.mxu1 %vm676_vm2, %v2037_v51 }
  0xfc   :  { %v2165_v46 = vpop.eup %2164  ;;  %849 = vmatprep.subr.bf16.mxu0 %v573_v57  ;;  %v575_v47 = vpack.c.bf16 %v2163_v60, %v2161_v8  ;;  %940 = vmatprep.mubr.bf16.mxu1 %v3578_v25 }
  0xfd   :  { %v2167_v4 = vpop.eup %2166 }
  0xfe   :  { %v2169_v22 = vpop.eup %2168  ;;  %922 = vmatprep.subr.bf16.mxu1 %v575_v47  ;;  %v572_v49 = vpack.c.bf16 %v2167_v4, %v2165_v46 }
  0xff   :  { %v2171_v43 = vpop.eup %2170 }
 0x100   :  { %850 = vmatpush1.bf16.msra.mxu0 %v572_v49  ;;  %v574_v41 = vpack.c.bf16 %v2171_v43, %v2169_v22 }
 0x102   :  { %923 = vmatpush1.bf16.msra.mxu1 %v574_v41 }
 0x103   :  { %1993 = vmatmul.mubr.msk.bf16.vlgmr.msra.gmra.mxu0 %vm676_vm2, %v2944_v0 }
 0x104   :  { %877 = vmatprep.mubr.bf16.mxu0 %v3578_v25 }
 0x105   :  { %1997 = vmatmul.mubr.msk.bf16.vlgmr.msra.gmra.mxu1 %vm676_vm2, %v2944_v0  ;;  %v3022_v0 = vpop.permute.xlu0 %648 }
 0x106   :  { %950 = vmatprep.mubr.bf16.mxu1 %v3578_v25 }
 0x109   :  { %v3026_v9 = vpop.permute.xlu0 %638 }
 0x10b   :  { %1994 = vmatmul.mubr.msk.bf16.gmra.mxu0 %vm676_vm2, %v2972_v32 }
 0x10c   :  { %887 = vmatprep.mubr.bf16.mxu0 %v3578_v25 }
 0x10d   :  { %1998 = vmatmul.mubr.msk.bf16.gmra.mxu1 %vm676_vm2, %v2972_v32  ;;  %v3036_v30 = vpop.permute.xlu0 %628 }
 0x10e   :  { %960 = vmatprep.mubr.bf16.mxu1 %v3578_v25 }
 0x111   :  { %v3046_v42 = vpop.permute.xlu0 %618 }
 0x113   :  { %1995 = vmatmul.mubr.msk.bf16.gmra.mxu0 %vm676_vm2, %v2036_v18 }
 0x114   :  { %897 = vmatprep.mubr.bf16.mxu0 %v3578_v25 }
 0x115   :  { %1999 = vmatmul.mubr.msk.bf16.gmra.mxu1 %vm676_vm2, %v2036_v18 }
 0x116   :  { %970 = vmatprep.mubr.bf16.mxu1 %v3578_v25 }
 0x11b   :  { %1996 = vmatmul.mubr.msk.bf16.gmra.mxu0 %vm676_vm2, %v2037_v51 }
 0x11c   :  { %1197 = vmatprep.mubr.bf16.mxu0 %v3578_v25 }
 0x11d   :  { %2000 = vmatmul.mubr.msk.bf16.gmra.mxu1 %vm676_vm2, %v2037_v51 }
 0x11e   :  { %1270 = vmatprep.mubr.bf16.mxu1 %v3578_v25 }
 0x1a1   :  { %v3028_v32 = vpop.f32.mrf.mxu0 }
 0x1a3   :  { %v3032_v12 = vpop.f32.mrf.mxu1  ;;  %v725_v10 = vpop.f32.mrf.mxu0 }
 0x1a4   :  { %v726_v21 = vadd.f32 %v725_v10, %v3046_v42 }
 0x1a5   :  { %v798_v3 = vpop.f32.mrf.mxu1  ;;  %v3034_v2 = vpop.f32.mrf.mxu0 }
 0x1a6   :  { %v799_v58 = vadd.f32 %v798_v3, %v3046_v42  ;;  %2172 = vtanh.f32 %v726_v21 }
 0x1a7   :  { %v3038_v40 = vpop.f32.mrf.mxu1  ;;  %v729_v55 = vpop.f32.mrf.mxu0 }
 0x1a8   :  { %v730_v16 = vadd.f32 %v729_v55, %v3050_v1  ;;  %2174 = vtanh.f32 %v799_v58 }
 0x1a9   :  { %v802_v23 = vpop.f32.mrf.mxu1  ;;  %v3042_v54 = vpop.f32.mrf.mxu0 }
 0x1aa   :  { %v803_v39 = vadd.f32 %v802_v23, %v3050_v1  ;;  %2176 = vtanh.f32 %v730_v16 }
 0x1ab   :  { %v3044_v26 = vpop.f32.mrf.mxu1  ;;  %v735_v48 = vpop.f32.mrf.mxu0 }
 0x1ac   :  { %v736_v44 = vadd.f32 %v735_v48, %v3036_v30  ;;  %2178 = vtanh.f32 %v803_v39 }
 0x1ad   :  { %v808_v7 = vpop.f32.mrf.mxu1  ;;  %v3048_v35 = vpop.f32.mrf.mxu0 }
 0x1ae   :  { %v809_v61 = vadd.f32 %v808_v7, %v3036_v30  ;;  %2180 = vtanh.f32 %v736_v44  ;;  %v738_v44 = vadd.f32 %v3048_v35, %v3040_v53 }
 0x1af   :  { %v3054_v28 = vpop.f32.mrf.mxu1  ;;  %v739_v56 = vpop.f32.mrf.mxu0 }
 0x1b0   :  { %v740_v36 = vadd.f32 %v739_v56, %v3040_v53  ;;  %2182 = vtanh.f32 %v809_v61 }
 0x1b1   :  { %v812_v17 = vpop.f32.mrf.mxu1  ;;  %v743_v52 = vpop.f32.mrf.mxu0 }
 0x1b2   :  { %v813_v5 = vadd.f32 %v812_v17, %v3040_v53  ;;  %2184 = vtanh.f32 %v740_v36  ;;  %v744_v21 = vadd.f32 %v743_v52, %v3026_v9  ;;  %v811_v52 = vadd.f32 %v3054_v28, %v3040_v53 }
 0x1b3   :  { %v816_v45 = vpop.f32.mrf.mxu1  ;;  %v745_v62 = vpop.f32.mrf.mxu0 }
 0x1b4   :  { %v746_v27 = vadd.f32 %v745_v62, %v3026_v9  ;;  %2186 = vtanh.f32 %v813_v5  ;;  %v3070_v8 = vpop.eup %2172  ;;  %v817_v39 = vadd.f32 %v816_v45, %v3026_v9  ;;  %v734_v45 = vadd.f32 %v3042_v54, %v3036_v30 }
 0x1b5   :  { %v818_v18 = vpop.f32.mrf.mxu1  ;;  %v747_v11 = vpop.f32.mrf.mxu0  ;;  %v801_v54 = vadd.f32 %v3038_v40, %v3050_v1 }
 0x1b6   :  { %v819_v33 = vadd.f32 %v818_v18, %v3026_v9  ;;  %2188 = vtanh.f32 %v746_v27  ;;  %v3072_v46 = vpop.eup %2174  ;;  %v748_v10 = vadd.f32 %v747_v11, %v3030_v50  ;;  %v807_v27 = vadd.f32 %v3044_v26, %v3036_v30 }
 0x1b7   :  { %v820_v37 = vpop.f32.mrf.mxu1  ;;  %v749_v24 = vpop.f32.mrf.mxu0 }
 0x1b8   :  { %v750_v14 = vadd.f32 %v749_v24, %v3030_v50  ;;  %2190 = vtanh.f32 %v819_v33  ;;  %v3076_v22 = vpop.eup %2176  ;;  %v821_v48 = vadd.f32 %v820_v37, %v3030_v50  ;;  %v728_v37 = vadd.f32 %v3034_v2, %v3050_v1 }
 0x1b9   :  { %v822_v15 = vpop.f32.mrf.mxu1  ;;  %v753_v34 = vpop.f32.mrf.mxu0  ;;  %v797_v2 = vadd.f32 %v3032_v12, %v3046_v42 }
 0x1ba   :  { %v823_v38 = vadd.f32 %v822_v15, %v3030_v50  ;;  %v754_v31 = vadd.f32 %v753_v34, %v3022_v0  ;;  %2192 = vtanh.f32 %v750_v14  ;;  %v3079_v41 = vpop.eup %2178  ;;  %v724_v34 = vadd.f32 %v3028_v32, %v3046_v42 }
 0x1bb   :  { %v826_v63 = vpop.f32.mrf.mxu1  ;;  %v755_v59 = vpop.f32.mrf.mxu0 }
 0x1bc   :  { %v756_v51 = vadd.f32 %v755_v59, %v3022_v0  ;;  %2194 = vtanh.f32 %v823_v38  ;;  %v827_v49 = vadd.f32 %v826_v63, %v3022_v0  ;;  %v3085_v23 = vpop.eup %2180 }
 0x1bd   :  { %v828_v19 = vpop.f32.mrf.mxu1  ;;  %v757_v20 = vpop.f32.mrf.mxu0  ;;  %2196 = vtanh.f32 %v754_v31 }
 0x1be   :  { %v829_v6 = vadd.f32 %v828_v19, %v3022_v0  ;;  %v758_v13 = vadd.f32 %v757_v20, %v3024_v29  ;;  %2198 = vtanh.f32 %v756_v51  ;;  %v3088_v7 = vpop.eup %2182 }
 0x1bf   :  { %v830_v57 = vpop.f32.mrf.mxu1  ;;  %v759_v60 = vpop.f32.mrf.mxu0 }
 0x1c0   :  { %2200 = vtanh.f32 %v829_v6  ;;  %v831_v47 = vadd.f32 %v830_v57, %v3024_v29  ;;  %v760_v4 = vadd.f32 %v759_v60, %v3024_v29  ;;  %v3093_v16 = vpop.eup %2184 }
 0x1c1   :  { %2202 = vtanh.f32 %v758_v13  ;;  %v832_v43 = vpop.f32.mrf.mxu1  ;;  %v3096_v17 = vpop.eup %2186 }
 0x1c2   :  { %2204 = vtanh.f32 %v831_v47  ;;  %v833_v3 = vadd.f32 %v832_v43, %v3024_v29 }
 0x1c3   :  { %v3083_v55 = vpop.f32.mrf.mxu0  ;;  %2206 = vtanh.f32 %v760_v4  ;;  %v3102_v36 = vpop.eup %2188 }
 0x1c4   :  { %2208 = vtanh.f32 %v833_v3 }
 0x1c5   :  { %v3091_v58 = vpop.f32.mrf.mxu1  ;;  %v871_v56 = vpop.f32.mrf.mxu0  ;;  %2210 = vtanh.f32 %v827_v49 }
 0x1c6   :  { %2212 = vtanh.f32 %v748_v10  ;;  %v3106_v5 = vpop.eup %2190  ;;  %v872_v19 = vadd.f32 %v871_v56, %v3046_v42 }
 0x1c7   :  { %v944_v61 = vpop.f32.mrf.mxu1  ;;  %v3100_v62 = vpop.f32.mrf.mxu0  ;;  %2214 = vtanh.f32 %v821_v48 }
 0x1c8   :  { %2216 = vtanh.f32 %v744_v21  ;;  %v2193_v35 = vpop.eup %2192  ;;  %v945_v32 = vadd.f32 %v944_v61, %v3046_v42 }
 0x1c9   :  { %v3110_v18 = vpop.f32.mrf.mxu1  ;;  %v875_v11 = vpop.f32.mrf.mxu0  ;;  %2218 = vtanh.f32 %v817_v39  ;;  %v1062_v39 = vpack.c.bf16 %v2193_v35, %v3102_v36 }
 0x1ca   :  { %v2195_v33 = vpop.eup %2194  ;;  %2220 = vtanh.f32 %v738_v44  ;;  %v876_v12 = vadd.f32 %v875_v11, %v3050_v1 }
 0x1cb   :  { %v948_v28 = vpop.f32.mrf.mxu1  ;;  %v3116_v24 = vpop.f32.mrf.mxu0  ;;  %2222 = vtanh.f32 %v811_v52  ;;  %v1064_v11 = vpack.c.bf16 %v2195_v33, %v3106_v5  ;;  %v1054_v33 = vpack.c.bf16 %v3093_v16, %v3085_v23 }
 0x1cc   :  { %v2197_v14 = vpop.eup %2196  ;;  %2224 = vtanh.f32 %v734_v45  ;;  %v949_v4 = vadd.f32 %v948_v28, %v3050_v1 }
 0x1cd   :  { %v2199_v15 = vpop.eup %2198  ;;  %v3122_v26 = vpop.f32.mrf.mxu1  ;;  %2226 = vtanh.f32 %v807_v27 }
 0x1ce   :  { %v881_v38 = vpop.f32.mrf.mxu0  ;;  %v2201_v31 = vpop.eup %2200  ;;  %2228 = vtanh.f32 %v728_v37 }
 0x1cf   :  { %v2203_v63 = vpop.eup %2202  ;;  %v954_v59 = vpop.f32.mrf.mxu1  ;;  %2230 = vtanh.f32 %v801_v54  ;;  %v882_v21 = vadd.f32 %v881_v38, %v3036_v30 }
 0x1d0   :  { %v3126_v51 = vpop.f32.mrf.mxu0  ;;  %v2205_v40 = vpop.eup %2204  ;;  %2232 = vtanh.f32 %v724_v34  ;;  %v1069_v3 = vpack.c.bf16 %v2203_v63, %v2197_v14  ;;  %v955_v61 = vadd.f32 %v954_v59, %v3036_v30  ;;  %v1056_v59 = vpack.c.bf16 %v3096_v17, %v3088_v7 }
 0x1d1   :  { %v2207_v20 = vpop.eup %2206  ;;  %v3130_v6 = vpop.f32.mrf.mxu1  ;;  %2234 = vtanh.f32 %v797_v2 }
 0x1d2   :  { %v885_v13 = vpop.f32.mrf.mxu0  ;;  %v2209_v57 = vpop.eup %2208  ;;  %v1070_v60 = vpack.c.bf16 %v2207_v20, %v2199_v15  ;;  %2236 = vtanh.f32 %v872_v19 }
 0x1d3   :  { %v2211_v47 = vpop.eup %2210  ;;  %v958_v49 = vpop.f32.mrf.mxu1  ;;  %v1072_v10 = vpack.c.bf16 %v2209_v57, %v2201_v31  ;;  %2238 = vtanh.f32 %v945_v32  ;;  %v886_v37 = vadd.f32 %v885_v13, %v3040_v53  ;;  %v1046_v13 = vpack.c.bf16 %v3076_v22, %v3070_v8 }
 0x1d4   :  { %v3134_v43 = vpop.f32.mrf.mxu0  ;;  %v2213_v48 = vpop.eup %2212  ;;  %1173 = vmatprep.subr.bf16.mxu0 %v1070_v60  ;;  %v1071_v56 = vpack.c.bf16 %v2205_v40, %v2211_v47  ;;  %2240 = vtanh.f32 %v876_v12  ;;  %v959_v36 = vadd.f32 %v958_v49, %v3040_v53  ;;  %v1048_v49 = vpack.c.bf16 %v3079_v41, %v3072_v46  ;;  %v3167_v46 = vld [vmem:[%s3506_s5] sm:$0xff]  }
 0x1d5   :  { %v2215_v44 = vpop.eup %2214  ;;  %v3139_v52 = vpop.f32.mrf.mxu1  ;;  %1246 = vmatprep.subr.bf16.mxu1 %v1072_v10  ;;  %1174 = vmatpush1.bf16.msra.mxu0 %v1069_v3  ;;  %2242 = vtanh.f32 %v949_v4 }
 0x1d6   :  { %v891_v45 = vpop.f32.mrf.mxu0  ;;  %v2217_v27 = vpop.eup %2216  ;;  %1247 = vmatpush1.bf16.msra.mxu1 %v1071_v56  ;;  %1175 = vmatprep.subr.bf16.mxu0 %v1062_v39  ;;  %2244 = vtanh.f32 %v882_v21 }
 0x1d7   :  { %v2219_v28 = vpop.eup %2218  ;;  %v964_v35 = vpop.f32.mrf.mxu1  ;;  %1248 = vmatprep.subr.bf16.mxu1 %v1064_v11  ;;  %v1061_v54 = vpack.c.bf16 %v2213_v48, %v2217_v27  ;;  %v892_v34 = vadd.f32 %v891_v45, %v3026_v9  ;;  %2246 = vtanh.f32 %v955_v61 }
 0x1d8   :  { %v3144_v14 = vpop.f32.mrf.mxu0  ;;  %v2221_v15 = vpop.eup %2220  ;;  %v1063_v5 = vpack.c.bf16 %v2215_v44, %v2219_v28  ;;  %v965_v31 = vadd.f32 %v964_v35, %v3026_v9  ;;  %2248 = vtanh.f32 %v886_v37 }
 0x1d9   :  { %v2223_v38 = vpop.eup %2222  ;;  %v3150_v2 = vpop.f32.mrf.mxu1  ;;  %1176 = vmatpush1.bf16.msra.mxu0 %v1061_v54  ;;  %2250 = vtanh.f32 %v959_v36 }
 0x1da   :  { %v895_v63 = vpop.f32.mrf.mxu0  ;;  %v2225_v40 = vpop.eup %2224  ;;  %1249 = vmatpush1.bf16.msra.mxu1 %v1063_v5  ;;  %1177 = vmatprep.subr.bf16.mxu0 %v1054_v33  ;;  %2252 = vtanh.f32 %v892_v34  ;;  %v967_v33 = vadd.f32 %v3150_v2, %v3030_v50  ;;  %v3208_v2 = vld [vmem:[%s3506_s5 + $0x8] sm:$0xff]  }
 0x1db   :  { %v896_v19 = vadd.f32 %v895_v63, %v3030_v50  ;;  %v2227_v20 = vpop.eup %2226  ;;  %v968_v23 = vpop.f32.mrf.mxu1  ;;  %1250 = vmatprep.subr.bf16.mxu1 %v1056_v59  ;;  %v1053_v32 = vpack.c.bf16 %v2221_v15, %v2225_v40  ;;  %2254 = vtanh.f32 %v965_v31  ;;  %v894_v15 = vadd.f32 %v3144_v14, %v3030_v50 }
 0x1dc   :  { %v899_v16 = vpop.f32.mrf.mxu0  ;;  %v2229_v57 = vpop.eup %2228  ;;  %v969_v12 = vadd.f32 %v968_v23, %v3030_v50  ;;  %v1055_v17 = vpack.c.bf16 %v2223_v38, %v2227_v20  ;;  %v890_v14 = vadd.f32 %v3134_v43, %v3026_v9  ;;  %v963_v38 = vadd.f32 %v3139_v52, %v3026_v9 }
 0x1dd   :  { %v900_v7 = vadd.f32 %v899_v16, %v3022_v0  ;;  %v2231_v60 = vpop.eup %2230  ;;  %v972_v47 = vpop.f32.mrf.mxu1  ;;  %1178 = vmatpush1.bf16.msra.mxu0 %v1053_v32  ;;  %2256 = vtanh.f32 %v896_v19  ;;  %v884_v31 = vadd.f32 %v3126_v51, %v3040_v53  ;;  %v957_v63 = vadd.f32 %v3130_v6, %v3040_v53 }
 0x1de   :  { %v901_v4 = vpop.f32.mrf.mxu0  ;;  %v2233_v10 = vpop.eup %2232  ;;  %1251 = vmatpush1.bf16.msra.mxu1 %v1055_v17  ;;  %1179 = vmatprep.subr.bf16.mxu0 %v1046_v13  ;;  %2258 = vtanh.f32 %v969_v12  ;;  %v973_v36 = vadd.f32 %v972_v47, %v3022_v0  ;;  %v880_v9 = vadd.f32 %v3116_v24, %v3036_v30  ;;  %v953_v51 = vadd.f32 %v3122_v26, %v3036_v30 }
 0x1df   :  { %v902_v3 = vadd.f32 %v901_v4, %v3022_v0  ;;  %v2235_v8 = vpop.eup %2234  ;;  %v974_v22 = vpop.f32.mrf.mxu1  ;;  %1252 = vmatprep.subr.bf16.mxu1 %v1048_v49  ;;  %v1045_v21 = vpack.c.bf16 %v2229_v57, %v2233_v10  ;;  %2260 = vtanh.f32 %v900_v7  ;;  %v874_v19 = vadd.f32 %v3100_v62, %v3050_v1  ;;  %v2041_v49 = vld [vmem:[%s3506_s5 + $0x18] sm:$0xff]  }
 0x1e0   :  { %v903_v48 = vpop.f32.mrf.mxu0  ;;  %v975_v56 = vadd.f32 %v974_v22, %v3022_v0  ;;  %v1047_v44 = vpack.c.bf16 %v2231_v60, %v2235_v8  ;;  %v3169_v41 = vpop.eup %2236  ;;  %v947_v6 = vadd.f32 %v3110_v18, %v3050_v1  ;;  %v870_v24 = vadd.f32 %v3083_v55, %v3046_v42  ;;  %v3233_v1 = vld [vmem:[%s3506_s5 + $0x10] sm:$0xff]  }
 0x1e1   :  { %v904_v39 = vadd.f32 %v903_v48, %v3024_v29  ;;  %2262 = vtanh.f32 %v902_v3  ;;  %v976_v61 = vpop.f32.mrf.mxu1  ;;  %1180 = vmatpush1.bf16.msra.mxu0 %v1045_v21  ;;  %v3171_v11 = vpop.eup %2238  ;;  %v943_v26 = vadd.f32 %v3091_v58, %v3046_v42 }
 0x1e2   :  { %v905_v45 = vpop.f32.mrf.mxu0  ;;  %2264 = vtanh.f32 %v975_v56  ;;  %v977_v27 = vadd.f32 %v976_v61, %v3024_v29  ;;  %1253 = vmatpush1.bf16.msra.mxu1 %v1047_v44  ;;  %v3175_v28 = vpop.eup %2240 }
 0x1e3   :  { %v906_v37 = vadd.f32 %v905_v45, %v3024_v29  ;;  %2266 = vtanh.f32 %v904_v39  ;;  %v978_v35 = vpop.f32.mrf.mxu1  ;;  %v3178_v54 = vpop.eup %2242  ;;  %v1050_v45 = vpack.c.bf16 %v3175_v28, %v3169_v41 }
 0x1e4   :  { %2268 = vtanh.f32 %v977_v27  ;;  %v979_v34 = vadd.f32 %v978_v35, %v3024_v29  ;;  %2005 = vmatmul.mubr.msk.bf16.vlgmr.msra.gmra.mxu0 %vm676_vm2, %v3167_v46  ;;  %v3185_v5 = vpop.eup %2244  ;;  %v3278_v41 = vpop.permute.xlu1 %1125 }
 0x1e5   :  { %2270 = vtanh.f32 %v906_v37  ;;  %2009 = vmatmul.mubr.msk.bf16.vlgmr.msra.gmra.mxu1 %vm676_vm2, %v3167_v46  ;;  %1207 = vmatprep.mubr.bf16.mxu0 %v3578_v25  ;;  %v3192_v0 = vpop.eup %2246  ;;  %v1052_v37 = vpack.c.bf16 %v3178_v54, %v3171_v11  ;;  %v3280_v11 = vpop.permute.xlu0 %1130 }
 0x1e6   :  { %2272 = vtanh.f32 %v979_v34  ;;  %1280 = vmatprep.mubr.bf16.mxu1 %v3578_v25  ;;  %v3197_v29 = vpop.eup %2248 }
 0x1e7   :  { %2274 = vtanh.f32 %v973_v36  ;;  %v3201_v50 = vpop.eup %2250  ;;  %v1058_v8 = vpack.c.bf16 %v3197_v29, %v3185_v5 }
 0x1e8   :  { %2276 = vtanh.f32 %v894_v15  ;;  %v2253_v43 = vpop.eup %2252  ;;  %v1060_v48 = vpack.c.bf16 %v3201_v50, %v3192_v0  ;;  %v3282_v54 = vpop.permute.xlu1 %1115 }
 0x1e9   :  { %2278 = vtanh.f32 %v967_v33  ;;  %v2255_v59 = vpop.eup %2254 }
 0x1ea   :  { %2280 = vtanh.f32 %v890_v14  ;;  %v2257_v52 = vpop.eup %2256 }
 0x1eb   :  { %2282 = vtanh.f32 %v963_v38  ;;  %v2259_v40 = vpop.eup %2258  ;;  %v1066_v12 = vpack.c.bf16 %v2257_v52, %v2253_v43 }
 0x1ec   :  { %2284 = vtanh.f32 %v884_v31  ;;  %2006 = vmatmul.mubr.msk.bf16.gmra.mxu0 %vm676_vm2, %v3208_v2  ;;  %v2261_v53 = vpop.eup %2260  ;;  %v1068_v17 = vpack.c.bf16 %v2259_v40, %v2255_v59  ;;  %v3292_v50 = vpop.permute.xlu1 %1105 }
 0x1ed   :  { %2286 = vtanh.f32 %v957_v63  ;;  %2010 = vmatmul.mubr.msk.bf16.gmra.mxu1 %vm676_vm2, %v3208_v2  ;;  %1217 = vmatprep.mubr.bf16.mxu0 %v3578_v25 }
 0x1ee   :  { %v2263_v30 = vpop.eup %2262  ;;  %2288 = vtanh.f32 %v880_v9  ;;  %1290 = vmatprep.mubr.bf16.mxu1 %v3578_v25 }
 0x1ef   :  { %v2265_v62 = vpop.eup %2264  ;;  %2290 = vtanh.f32 %v953_v51 }
 0x1f0   :  { %v2267_v20 = vpop.eup %2266  ;;  %2292 = vtanh.f32 %v874_v19  ;;  %v3302_v51 = vpop.permute.xlu1 %1095 }
 0x1f1   :  { %v2269_v18 = vpop.eup %2268  ;;  %2294 = vtanh.f32 %v947_v6  ;;  %v1073_v58 = vpack.c.bf16 %v2267_v20, %v2261_v53 }
 0x1f2   :  { %v2271_v23 = vpop.eup %2270  ;;  %2296 = vtanh.f32 %v870_v24 }
 0x1f3   :  { %v2273_v55 = vpop.eup %2272  ;;  %2298 = vtanh.f32 %v943_v26  ;;  %v1074_v16 = vpack.c.bf16 %v2271_v23, %v2263_v30 }
 0x1f4   :  { %v2275_v32 = vpop.eup %2274  ;;  %2007 = vmatmul.mubr.msk.bf16.gmra.mxu0 %vm676_vm2, %v3233_v1  ;;  %v1076_v42 = vpack.c.bf16 %v2273_v55, %v2265_v62 }
 0x1f5   :  { %v2277_v13 = vpop.eup %2276  ;;  %2011 = vmatmul.mubr.msk.bf16.gmra.mxu1 %vm676_vm2, %v3233_v1  ;;  %1319 = vmatprep.subr.bf16.mxu0 %v1074_v16  ;;  %v1075_v57 = vpack.c.bf16 %v2269_v18, %v2275_v32 }
 0x1f6   :  { %v2279_v7 = vpop.eup %2278  ;;  %1392 = vmatprep.subr.bf16.mxu1 %v1076_v42  ;;  %1320 = vmatpush1.bf16.msra.mxu0 %v1073_v58 }
 0x1f7   :  { %v2281_v60 = vpop.eup %2280  ;;  %1393 = vmatpush1.bf16.msra.mxu1 %v1075_v57  ;;  %1321 = vmatprep.subr.bf16.mxu0 %v1066_v12 }
 0x1f8   :  { %v2283_v47 = vpop.eup %2282  ;;  %1394 = vmatprep.subr.bf16.mxu1 %v1068_v17  ;;  %v1065_v4 = vpack.c.bf16 %v2277_v13, %v2281_v60  ;;  %1227 = vmatprep.mubr.bf16.mxu0 %v3578_v25 }
 0x1f9   :  { %v2285_v10 = vpop.eup %2284  ;;  %v1067_v3 = vpack.c.bf16 %v2279_v7, %v2283_v47  ;;  %1300 = vmatprep.mubr.bf16.mxu1 %v3578_v25 }
 0x1fa   :  { %v2287_v22 = vpop.eup %2286  ;;  %1322 = vmatpush1.bf16.msra.mxu0 %v1065_v4 }
 0x1fb   :  { %v2289_v21 = vpop.eup %2288  ;;  %1395 = vmatpush1.bf16.msra.mxu1 %v1067_v3  ;;  %1323 = vmatprep.subr.bf16.mxu0 %v1058_v8 }
 0x1fc   :  { %v2291_v56 = vpop.eup %2290  ;;  %1396 = vmatprep.subr.bf16.mxu1 %v1060_v48  ;;  %2008 = vmatmul.mubr.msk.bf16.gmra.mxu0 %vm676_vm2, %v2041_v49  ;;  %v1057_v39 = vpack.c.bf16 %v2285_v10, %v2289_v21 }
 0x1fd   :  { %v2293_v44 = vpop.eup %2292  ;;  %2012 = vmatmul.mubr.msk.bf16.gmra.mxu1 %vm676_vm2, %v2041_v49  ;;  %v1059_v61 = vpack.c.bf16 %v2287_v22, %v2291_v56  ;;  %1343 = vmatprep.mubr.bf16.mxu0 %v3578_v25 }
 0x1fe   :  { %v2295_v27 = vpop.eup %2294  ;;  %1324 = vmatpush1.bf16.msra.mxu0 %v1057_v39  ;;  %1416 = vmatprep.mubr.bf16.mxu1 %v3578_v25 }
 0x1ff   :  { %v2297_v36 = vpop.eup %2296  ;;  %1397 = vmatpush1.bf16.msra.mxu1 %v1059_v61  ;;  %1325 = vmatprep.subr.bf16.mxu0 %v1050_v45 }
 0x200   :  { %v2299_v35 = vpop.eup %2298  ;;  %1398 = vmatprep.subr.bf16.mxu1 %v1052_v37  ;;  %v1049_v15 = vpack.c.bf16 %v2293_v44, %v2297_v36 }
 0x201   :  { %v1051_v34 = vpack.c.bf16 %v2295_v27, %v2299_v35 }
 0x202   :  { %1326 = vmatpush1.bf16.msra.mxu0 %v1049_v15 }
 0x203   :  { %1399 = vmatpush1.bf16.msra.mxu1 %v1051_v34 }
 0x205   :  { %2013 = vmatmul.mubr.msk.bf16.vlgmr.msra.gmra.mxu0 %vm676_vm2, %v3167_v46 }
 0x206   :  { %2017 = vmatmul.mubr.msk.bf16.vlgmr.msra.gmra.mxu1 %vm676_vm2, %v3167_v46  ;;  %1353 = vmatprep.mubr.bf16.mxu0 %v3578_v25  ;;  %v2452_v46 = vmov 0.0  }
 0x207   :  { %1426 = vmatprep.mubr.bf16.mxu1 %v3578_v25 }
 0x20d   :  { %2014 = vmatmul.mubr.msk.bf16.gmra.mxu0 %vm676_vm2, %v3208_v2 }
 0x20e   :  { %2018 = vmatmul.mubr.msk.bf16.gmra.mxu1 %vm676_vm2, %v3208_v2  ;;  %1363 = vmatprep.mubr.bf16.mxu0 %v3578_v25 }
 0x20f   :  { %1436 = vmatprep.mubr.bf16.mxu1 %v3578_v25 }
 0x215   :  { %2015 = vmatmul.mubr.msk.bf16.gmra.mxu0 %vm676_vm2, %v3233_v1 }
 0x216   :  { %2019 = vmatmul.mubr.msk.bf16.gmra.mxu1 %vm676_vm2, %v3233_v1  ;;  %1373 = vmatprep.mubr.bf16.mxu0 %v3578_v25 }
 0x217   :  { %1446 = vmatprep.mubr.bf16.mxu1 %v3578_v25  ;;  %v3286_v25 = vpop.permute.xlu0 %1120 }
 0x21b   :  { %v3296_v43 = vpop.permute.xlu0 %1110 }
 0x21d   :  { %2016 = vmatmul.mubr.msk.bf16.gmra.mxu0 %vm676_vm2, %v2041_v49 }
 0x21e   :  { %2020 = vmatmul.mubr.msk.bf16.gmra.mxu1 %vm676_vm2, %v2041_v49  ;;  %1600 = vmatprep.mubr.f32.mxu0 %v2452_v46 }
 0x21f   :  { %1671 = vmatprep.mubr.f32.mxu1 %v2452_v46  ;;  %v3307_v6 = vpop.permute.xlu0 %1100 }
 0x2a4   :  { %v1199_v28 = vpop.f32.mrf.mxu0 }
 0x2a5   :  { %v3284_v5 = vpop.f32.mrf.mxu1  ;;  %v1200_v19 = vadd.f32 %v1199_v28, %v3302_v51 }
 0x2a6   :  { %v1201_v33 = vpop.f32.mrf.mxu0 }
 0x2a7   :  { %v3288_v0 = vpop.f32.mrf.mxu1  ;;  %v1202_v30 = vadd.f32 %v1201_v33, %v3302_v51  ;;  %2300 = vtanh.f32 %v1200_v19 }
 0x2a8   :  { %v1203_v14 = vpop.f32.mrf.mxu0 }
 0x2a9   :  { %v3290_v29 = vpop.f32.mrf.mxu1  ;;  %v1204_v62 = vadd.f32 %v1203_v14, %v3307_v6  ;;  %2302 = vtanh.f32 %v1202_v30 }
 0x2aa   :  { %v1205_v38 = vpop.f32.mrf.mxu0 }
 0x2ab   :  { %v3294_v31 = vpop.f32.mrf.mxu1  ;;  %v1206_v20 = vadd.f32 %v1205_v38, %v3307_v6  ;;  %2304 = vtanh.f32 %v1204_v62 }
 0x2ac   :  { %v1209_v2 = vpop.f32.mrf.mxu0 }
 0x2ad   :  { %v3298_v63 = vpop.f32.mrf.mxu1  ;;  %v1210_v18 = vadd.f32 %v1209_v2, %v3292_v50  ;;  %2306 = vtanh.f32 %v1206_v20 }
 0x2ae   :  { %v1211_v59 = vpop.f32.mrf.mxu0 }
 0x2af   :  { %v3300_v9 = vpop.f32.mrf.mxu1  ;;  %v1212_v55 = vadd.f32 %v1211_v59, %v3292_v50  ;;  %2308 = vtanh.f32 %v1210_v18 }
 0x2b0   :  { %v1213_v52 = vpop.f32.mrf.mxu0 }
 0x2b1   :  { %v3304_v40 = vpop.f32.mrf.mxu1  ;;  %v1214_v32 = vadd.f32 %v1213_v52, %v3296_v43  ;;  %2310 = vtanh.f32 %v1212_v55 }
 0x2b2   :  { %v1215_v53 = vpop.f32.mrf.mxu0 }
 0x2b3   :  { %v3310_v24 = vpop.f32.mrf.mxu1  ;;  %v1216_v58 = vadd.f32 %v1215_v53, %v3296_v43  ;;  %2312 = vtanh.f32 %v1214_v32 }
 0x2b4   :  { %v1219_v26 = vpop.f32.mrf.mxu0  ;;  %v3327_v44 = vpop.eup %2300 }
 0x2b5   :  { %v3314_v1 = vpop.f32.mrf.mxu1  ;;  %v1220_v57 = vadd.f32 %v1219_v26, %v3282_v54  ;;  %2314 = vtanh.f32 %v1216_v58 }
 0x2b6   :  { %v1221_v23 = vpop.f32.mrf.mxu0  ;;  %v3331_v37 = vpop.eup %2302  ;;  %v1293_v26 = vadd.f32 %v3314_v1, %v3282_v54  ;;  %v1285_v1 = vadd.f32 %v3300_v9, %v3292_v50  ;;  %v1277_v9 = vadd.f32 %v3290_v29, %v3307_v6 }
 0x2b7   :  { %v1294_v16 = vpop.f32.mrf.mxu1  ;;  %v1222_v7 = vadd.f32 %v1221_v23, %v3282_v54  ;;  %2316 = vtanh.f32 %v1220_v57  ;;  %v1289_v23 = vadd.f32 %v3310_v24, %v3296_v43  ;;  %v1283_v24 = vadd.f32 %v3298_v63, %v3292_v50 }
 0x2b8   :  { %v1223_v42 = vpop.f32.mrf.mxu0  ;;  %v3335_v15 = vpop.eup %2304  ;;  %v1295_v53 = vadd.f32 %v1294_v16, %v3282_v54  ;;  %v1287_v16 = vadd.f32 %v3304_v40, %v3296_v43  ;;  %v1279_v40 = vadd.f32 %v3294_v31, %v3307_v6  ;;  %v1273_v31 = vadd.f32 %v3284_v5, %v3302_v51 }
 0x2b9   :  { %v1296_v13 = vpop.f32.mrf.mxu1  ;;  %v1224_v60 = vadd.f32 %v1223_v42, %v3286_v25  ;;  %2318 = vtanh.f32 %v1222_v7 }
 0x2ba   :  { %v1225_v12 = vpop.f32.mrf.mxu0  ;;  %v3338_v33 = vpop.eup %2306  ;;  %v1297_v59 = vadd.f32 %v1296_v13, %v3286_v25 }
 0x2bb   :  { %v1298_v17 = vpop.f32.mrf.mxu1  ;;  %v1226_v4 = vadd.f32 %v1225_v12, %v3286_v25  ;;  %2320 = vtanh.f32 %v1224_v60 }
 0x2bc   :  { %v1229_v47 = vpop.f32.mrf.mxu0  ;;  %v1299_v14 = vadd.f32 %v1298_v17, %v3286_v25  ;;  %v3343_v2 = vpop.eup %2308 }
 0x2bd   :  { %v1302_v49 = vpop.f32.mrf.mxu1  ;;  %v1230_v10 = vadd.f32 %v1229_v47, %v3278_v41  ;;  %2322 = vtanh.f32 %v1226_v4 }
 0x2be   :  { %v1231_v3 = vpop.f32.mrf.mxu0  ;;  %v1303_v34 = vadd.f32 %v1302_v49, %v3278_v41  ;;  %v3346_v19 = vpop.eup %2310  ;;  %v1275_v49 = vadd.f32 %v3288_v0, %v3302_v51 }
 0x2bf   :  { %v1232_v8 = vadd.f32 %v1231_v3, %v3278_v41  ;;  %v1304_v22 = vpop.f32.mrf.mxu1  ;;  %2324 = vtanh.f32 %v1230_v10 }
 0x2c0   :  { %v1233_v48 = vpop.f32.mrf.mxu0  ;;  %v1305_v36 = vadd.f32 %v1304_v22, %v3278_v41  ;;  %v3351_v62 = vpop.eup %2312 }
 0x2c1   :  { %v1234_v21 = vadd.f32 %v1233_v48, %v3280_v11  ;;  %v1306_v56 = vpop.f32.mrf.mxu1  ;;  %2326 = vtanh.f32 %v1232_v8 }
 0x2c2   :  { %v1235_v39 = vpop.f32.mrf.mxu0  ;;  %v1307_v61 = vadd.f32 %v1306_v56, %v3280_v11  ;;  %v3355_v18 = vpop.eup %2314 }
 0x2c3   :  { %v1236_v45 = vadd.f32 %v1235_v39, %v3280_v11  ;;  %v1308_v27 = vpop.f32.mrf.mxu1  ;;  %2328 = vtanh.f32 %v1234_v21 }
 0x2c4   :  { %v1309_v35 = vadd.f32 %v1308_v27, %v3280_v11  ;;  %v3361_v32 = vpop.eup %2316 }
 0x2c5   :  { %2330 = vtanh.f32 %v1236_v45  ;;  %v1345_v28 = vpop.f32.mrf.mxu0 }
 0x2c6   :  { %2332 = vtanh.f32 %v1309_v35  ;;  %v3341_v38 = vpop.f32.mrf.mxu1  ;;  %v3365_v58 = vpop.eup %2318  ;;  %v1346_v48 = vadd.f32 %v1345_v28, %v3302_v51 }
 0x2c7   :  { %2334 = vtanh.f32 %v1307_v61  ;;  %v1347_v52 = vpop.f32.mrf.mxu0 }
 0x2c8   :  { %2336 = vtanh.f32 %v1305_v36  ;;  %v3349_v30 = vpop.f32.mrf.mxu1  ;;  %v2321_v57 = vpop.eup %2320  ;;  %v1348_v56 = vadd.f32 %v1347_v52, %v3302_v51 }
 0x2c9   :  { %2338 = vtanh.f32 %v1303_v34  ;;  %v1349_v20 = vpop.f32.mrf.mxu0 }
 0x2ca   :  { %2340 = vtanh.f32 %v1299_v14  ;;  %v3359_v55 = vpop.f32.mrf.mxu1  ;;  %v2323_v7 = vpop.eup %2322  ;;  %v1350_v61 = vadd.f32 %v1349_v20, %v3307_v6 }
 0x2cb   :  { %2342 = vtanh.f32 %v1297_v59  ;;  %v1351_v42 = vpop.f32.mrf.mxu0 }
 0x2cc   :  { %2344 = vtanh.f32 %v1295_v53  ;;  %v3369_v13 = vpop.f32.mrf.mxu1  ;;  %v2325_v60 = vpop.eup %2324  ;;  %v1352_v36 = vadd.f32 %v1351_v42, %v3307_v6 }
 0x2cd   :  { %2346 = vtanh.f32 %v1293_v26  ;;  %v1355_v12 = vpop.f32.mrf.mxu0 }
 0x2ce   :  { %2348 = vtanh.f32 %v1289_v23  ;;  %v3375_v17 = vpop.f32.mrf.mxu1  ;;  %v2327_v4 = vpop.eup %2326  ;;  %v1356_v28 = vadd.f32 %v1355_v12, %v3292_v50 }
 0x2cf   :  { %2350 = vtanh.f32 %v1287_v16  ;;  %v1357_v47 = vpop.f32.mrf.mxu0 }
 0x2d0   :  { %2352 = vtanh.f32 %v1285_v1  ;;  %v3381_v63 = vpop.f32.mrf.mxu1  ;;  %v2329_v10 = vpop.eup %2328  ;;  %v1358_v52 = vadd.f32 %v1357_v47, %v3292_v50 }
 0x2d1   :  { %2354 = vtanh.f32 %v1283_v24  ;;  %v1359_v3 = vpop.f32.mrf.mxu0 }
 0x2d2   :  { %v2331_v8 = vpop.eup %2330  ;;  %2356 = vtanh.f32 %v1279_v40  ;;  %v3385_v22 = vpop.f32.mrf.mxu1  ;;  %v1360_v20 = vadd.f32 %v1359_v3, %v3296_v43 }
 0x2d3   :  { %v2333_v29 = vpop.eup %2332  ;;  %2358 = vtanh.f32 %v1277_v9  ;;  %v1361_v21 = vpop.f32.mrf.mxu0  ;;  %1552 = vmatprep.subr.mxu0 %v2331_v8 }
 0x2d4   :  { %v2335_v0 = vpop.eup %2334  ;;  %2360 = vtanh.f32 %v1275_v49  ;;  %v3389_v39 = vpop.f32.mrf.mxu1  ;;  %1623 = vmatprep.subr.mxu1 %v2333_v29  ;;  %1553 = vmatpush1.msra.mxu0 %v2329_v10  ;;  %v1362_v42 = vadd.f32 %v1361_v21, %v3296_v43 }
 0x2d5   :  { %v2337_v5 = vpop.eup %2336  ;;  %2362 = vtanh.f32 %v1273_v31  ;;  %v1365_v45 = vpop.f32.mrf.mxu0  ;;  %1624 = vmatpush1.msra.mxu1 %v2335_v0  ;;  %1554 = vmatprep.subr.mxu0 %v2327_v4 }
 0x2d6   :  { %v2339_v27 = vpop.eup %2338  ;;  %v3393_v35 = vpop.f32.mrf.mxu1  ;;  %1625 = vmatprep.subr.mxu1 %v2337_v5  ;;  %1555 = vmatpush1.msra.mxu0 %v2325_v60  ;;  %2364 = vtanh.f32 %v1346_v48 }
 0x2d7   :  { %v2341_v34 = vpop.eup %2340  ;;  %v1367_v14 = vpop.f32.mrf.mxu0  ;;  %1626 = vmatpush1.msra.mxu1 %v2339_v27  ;;  %1556 = vmatprep.subr.mxu0 %v2323_v7  ;;  %2366 = vtanh.f32 %v1348_v56 }
 0x2d8   :  { %v2343_v59 = vpop.eup %2342  ;;  %v3397_v53 = vpop.f32.mrf.mxu1  ;;  %1627 = vmatprep.subr.mxu1 %v2341_v34  ;;  %1557 = vmatpush1.msra.mxu0 %v2321_v57  ;;  %2368 = vtanh.f32 %v1350_v61  ;;  %v1366_v57 = vadd.f32 %v1365_v45, %v3282_v54 }
 0x2d9   :  { %v2345_v26 = vpop.eup %2344  ;;  %v1369_v23 = vpop.f32.mrf.mxu0  ;;  %1628 = vmatpush1.msra.mxu1 %v2343_v59  ;;  %1558 = vmatprep.subr.mxu0 %v3365_v58  ;;  %2370 = vtanh.f32 %v1352_v36  ;;  %v1368_v58 = vadd.f32 %v1367_v14, %v3282_v54 }
 0x2da   :  { %v2347_v16 = vpop.eup %2346  ;;  %v3402_v1 = vpop.f32.mrf.mxu1  ;;  %1629 = vmatprep.subr.mxu1 %v2345_v26  ;;  %1559 = vmatpush1.msra.mxu0 %v3361_v32  ;;  %2372 = vtanh.f32 %v1356_v28  ;;  %v1370_v32 = vadd.f32 %v1369_v23, %v3286_v25 }
 0x2db   :  { %v2349_v24 = vpop.eup %2348  ;;  %v1371_v12 = vpop.f32.mrf.mxu0  ;;  %1630 = vmatpush1.msra.mxu1 %v2347_v16  ;;  %1560 = vmatprep.subr.mxu0 %v3355_v18  ;;  %2374 = vtanh.f32 %v1358_v52  ;;  %v1443_v59 = vadd.f32 %v3402_v1, %v3286_v25 }
 0x2dc   :  { %v2351_v7 = vpop.eup %2350  ;;  %v1444_v40 = vpop.f32.mrf.mxu1  ;;  %1631 = vmatprep.subr.mxu1 %v2349_v24  ;;  %1561 = vmatpush1.msra.mxu0 %v3351_v62  ;;  %2376 = vtanh.f32 %v1360_v20  ;;  %v1372_v18 = vadd.f32 %v1371_v12, %v3286_v25  ;;  %v1435_v20 = vadd.f32 %v3389_v39, %v3296_v43  ;;  %v1425_v39 = vadd.f32 %v3369_v13, %v3307_v6 }
 0x2dd   :  { %v2353_v60 = vpop.eup %2352  ;;  %v1375_v9 = vpop.f32.mrf.mxu0  ;;  %1632 = vmatpush1.msra.mxu1 %v2351_v7  ;;  %1562 = vmatprep.subr.mxu0 %v3346_v19  ;;  %2378 = vtanh.f32 %v1362_v42  ;;  %v1445_v28 = vadd.f32 %v1444_v40, %v3286_v25  ;;  %v1433_v25 = vadd.f32 %v3385_v22, %v3296_v43  ;;  %v1423_v43 = vadd.f32 %v3359_v55, %v3307_v6 }
 0x2de   :  { %v2355_v47 = vpop.eup %2354  ;;  %v1448_v4 = vpop.f32.mrf.mxu1  ;;  %1633 = vmatprep.subr.mxu1 %v2353_v60  ;;  %1563 = vmatpush1.msra.mxu0 %v3343_v2  ;;  %2380 = vtanh.f32 %v1366_v57  ;;  %v1376_v62 = vadd.f32 %v1375_v9, %v3278_v41  ;;  %v3420_v2 = vld [vmem:[%s3508_s7] sm:$0x1] }
 0x2df   :  { %v2357_v49 = vpop.eup %2356  ;;  %v1377_v10 = vpop.f32.mrf.mxu0  ;;  %1634 = vmatpush1.msra.mxu1 %v2355_v47  ;;  %1564 = vmatprep.subr.mxu0 %v3338_v33  ;;  %2382 = vtanh.f32 %v1368_v58  ;;  %v1449_v36 = vadd.f32 %v1448_v4, %v3278_v41 }
 0x2e0   :  { %v2359_v31 = vpop.eup %2358  ;;  %v1378_v19 = vadd.f32 %v1377_v10, %v3278_v41  ;;  %v1450_v3 = vpop.f32.mrf.mxu1  ;;  %1635 = vmatprep.subr.mxu1 %v2357_v49  ;;  %1565 = vmatpush1.msra.mxu0 %v3335_v15  ;;  %2384 = vtanh.f32 %v1370_v32  ;;  %v2453_v10 = vmov 1966171168  }
 0x2e1   :  { %v2361_v8 = vpop.eup %2360  ;;  %v1379_v29 = vpop.f32.mrf.mxu0  ;;  %1636 = vmatpush1.msra.mxu1 %v2359_v31  ;;  %1566 = vmatprep.subr.mxu0 %v3331_v37  ;;  %2386 = vtanh.f32 %v1372_v18  ;;  %v1451_v61 = vadd.f32 %v1450_v3, %v3278_v41  ;;  %v1439_v41 = vadd.f32 %v3393_v35, %v3282_v54  ;;  %v1833_v31 = vunpack.c.l.s4 %v2453_v10 }
 0x2e2   :  { %v2363_v33 = vpop.eup %2362  ;;  %v1380_v48 = vadd.f32 %v1379_v29, %v3280_v11  ;;  %v1452_v21 = vpop.f32.mrf.mxu1  ;;  %1637 = vmatprep.subr.mxu1 %v2361_v8  ;;  %1567 = vmatpush1.msra.mxu0 %v3327_v44  ;;  %2388 = vtanh.f32 %v1376_v62  ;;  %v3586_v8 = vld [vmem:[#allocation9_spill] sm:$0xff] }
 0x2e3   :  { %v1381_v15 = vpop.f32.mrf.mxu0  ;;  %1638 = vmatpush1.msra.mxu1 %v2363_v33  ;;  %2021 = vmatmul.mubr.msk.f32.vlgmr.msra.gmra.mxu0 %vm676_vm2, %v3420_v2  ;;  %v3427_v0 = vpop.eup %2364  ;;  %2390 = vtanh.f32 %v1378_v19  ;;  %v1453_v56 = vadd.f32 %v1452_v21, %v3280_v11  ;;  %v3587_v29 = vsub.s32 0, %v3586_v8  ;;  %v1834_v21 = vunpack.c.0.s8 %v1833_v31 }
 0x2e4   :  { %v1382_v37 = vadd.f32 %v1381_v15, %v3280_v11  ;;  %v1454_v5 = vpop.f32.mrf.mxu1  ;;  %2022 = vmatmul.mubr.msk.f32.vlgmr.msra.gmra.mxu1 %vm676_vm2, %v3420_v2  ;;  %1742 = vmatprep.mubr.f32.mxu0 %v2452_v46  ;;  %v3434_v44 = vpop.eup %2366  ;;  %2392 = vtanh.f32 %v1380_v48 }
 0x2e5   :  { %v1455_v45 = vadd.f32 %v1454_v5, %v3280_v11  ;;  %1813 = vmatprep.mubr.f32.mxu1 %v2452_v46  ;;  %v3439_v27 = vpop.eup %2368  ;;  %v1441_v46 = vadd.f32 %v3397_v53, %v3282_v54  ;;  %v1431_v53 = vadd.f32 %v3381_v63, %v3292_v50  ;;  %v1429_v54 = vadd.f32 %v3375_v17, %v3292_v50  ;;  %v1527_v62 = vpop.permute.xlu0 %1526 }
 0x2e6   :  { %2394 = vtanh.f32 %v1382_v37  ;;  %v3442_v34 = vpop.eup %2370  ;;  %v1421_v63 = vadd.f32 %v3349_v30, %v3302_v51  ;;  %v1419_v50 = vadd.f32 %v3341_v38, %v3302_v51  ;;  %v1532_v33 = vrot.slane %v1527_v62, %v3587_v29 }
 0x2e7   :  { %2396 = vtanh.f32 %v1455_v45  ;;  %v3445_v14 = vpop.eup %2372  ;;  %v1837_v5 = vsub.s32 %v1834_v21, %v3586_v8 }
 0x2e8   :  { %2398 = vtanh.f32 %v1453_v56  ;;  %v3449_v52 = vpop.eup %2374 }
 0x2e9   :  { %2400 = vtanh.f32 %v1451_v61  ;;  %v2377_v11 = vpop.eup %2376 }
 0x2ea   :  { %2402 = vtanh.f32 %v1449_v36  ;;  %v2379_v26 = vpop.eup %2378 }
 0x2eb   :  { %2404 = vtanh.f32 %v1445_v28  ;;  %v2381_v23 = vpop.eup %2380 }
 0x2ec   :  { %2406 = vtanh.f32 %v1443_v59  ;;  %v2383_v16 = vpop.eup %2382 }
 0x2ed   :  { %2408 = vtanh.f32 %v1441_v46  ;;  %v2385_v42 = vpop.eup %2384 }
 0x2ee   :  { %2410 = vtanh.f32 %v1439_v41  ;;  %v2387_v35 = vpop.eup %2386 }
 0x2ef   :  { %2412 = vtanh.f32 %v1435_v20  ;;  %v2389_v1 = vpop.eup %2388 }
 0x2f0   :  { %2414 = vtanh.f32 %v1433_v25  ;;  %v2391_v22 = vpop.eup %2390  ;;  %v1980_v25 = vld [vmem:[%s3502_s1 + $0x3] ss:$8 sm:$0xf0] }
 0x2f1   :  { %2416 = vtanh.f32 %v1431_v53  ;;  %v2393_v24 = vpop.eup %2392 }
 0x2f2   :  { %2418 = vtanh.f32 %v1429_v54 }
 0x2f3   :  { %v2395_v17 = vpop.eup %2394  ;;  %2420 = vtanh.f32 %v1425_v39  ;;  %v1522_v39 = vld [vmem:[#allocation2] sm:$0xff] }
 0x2f4   :  { %v2397_v57 = vpop.eup %2396  ;;  %2422 = vtanh.f32 %v1423_v43  ;;  %1694 = vmatprep.subr.mxu0 %v2395_v17 }
 0x2f5   :  { %v2399_v13 = vpop.eup %2398  ;;  %2424 = vtanh.f32 %v1421_v63  ;;  %1765 = vmatprep.subr.mxu1 %v2397_v57  ;;  %1695 = vmatpush1.msra.mxu0 %v2393_v24 }
 0x2f6   :  { %v2401_v6 = vpop.eup %2400  ;;  %2426 = vtanh.f32 %v1419_v50  ;;  %1766 = vmatpush1.msra.mxu1 %v2399_v13  ;;  %1696 = vmatprep.subr.mxu0 %v2391_v22 }
 0x2f7   :  { %v2403_v30 = vpop.eup %2402  ;;  %1767 = vmatprep.subr.mxu1 %v2401_v6  ;;  %1697 = vmatpush1.msra.mxu0 %v2389_v1 }
 0x2f8   :  { %v2405_v55 = vpop.eup %2404  ;;  %1768 = vmatpush1.msra.mxu1 %v2403_v30  ;;  %1698 = vmatprep.subr.mxu0 %v2387_v35 }
 0x2f9   :  { %v2407_v51 = vpop.eup %2406  ;;  %1769 = vmatprep.subr.mxu1 %v2405_v55  ;;  %1699 = vmatpush1.msra.mxu0 %v2385_v42 }
 0x2fa   :  { %v2409_v38 = vpop.eup %2408  ;;  %1770 = vmatpush1.msra.mxu1 %v2407_v51  ;;  %1700 = vmatprep.subr.mxu0 %v2383_v16 }
 0x2fb   :  { %v2411_v12 = vpop.eup %2410  ;;  %1771 = vmatprep.subr.mxu1 %v2409_v38  ;;  %1701 = vmatpush1.msra.mxu0 %v2381_v23  ;;  %v1979_v23 = vld [vmem:[%s3502_s1 + $0x3] ss:$8 sm:$0xf] }
 0x2fc   :  { %v2413_v7 = vpop.eup %2412  ;;  %1772 = vmatpush1.msra.mxu1 %v2411_v12  ;;  %1702 = vmatprep.subr.mxu0 %v2379_v26  ;;  %v82_v42 = vor.u32 %v1980_v25, %v1979_v23 }
 0x2fd   :  { %v2415_v58 = vpop.eup %2414  ;;  %1773 = vmatprep.subr.mxu1 %v2413_v7  ;;  %1703 = vmatpush1.msra.mxu0 %v2377_v11 }
 0x2fe   :  { %v2417_v40 = vpop.eup %2416  ;;  %1774 = vmatpush1.msra.mxu1 %v2415_v58  ;;  %1704 = vmatprep.subr.mxu0 %v3449_v52 }
 0x2ff   :  { %v2419_v60 = vpop.eup %2418  ;;  %1775 = vmatprep.subr.mxu1 %v2417_v40  ;;  %1705 = vmatpush1.msra.mxu0 %v3445_v14 }
 0x300   :  { %v2421_v32 = vpop.eup %2420  ;;  %1776 = vmatpush1.msra.mxu1 %v2419_v60  ;;  %1706 = vmatprep.subr.mxu0 %v3442_v34 }
 0x301   :  { %v2423_v9 = vpop.eup %2422  ;;  %1777 = vmatprep.subr.mxu1 %v2421_v32  ;;  %1707 = vmatpush1.msra.mxu0 %v3439_v27 }
 0x302   :  { %v2425_v47 = vpop.eup %2424  ;;  %1778 = vmatpush1.msra.mxu1 %v2423_v9  ;;  %1708 = vmatprep.subr.mxu0 %v3434_v44 }
 0x303   :  { %v2427_v18 = vpop.eup %2426  ;;  %1779 = vmatprep.subr.mxu1 %v2425_v47  ;;  %1709 = vmatpush1.msra.mxu0 %v3427_v0 }
 0x304   :  { %1780 = vmatpush1.msra.mxu1 %v2427_v18  ;;  %2023 = vmatmul.mubr.msk.f32.vlgmr.msra.gmra.mxu0 %vm676_vm2, %v3420_v2 }
 0x305   :  { %2024 = vmatmul.mubr.msk.f32.vlgmr.msra.gmra.mxu1 %vm676_vm2, %v3420_v2 }
 0x3a3   :  { %v1602_v4 = vpop.f32.mrf.mxu0 }
 0x3a4   :  { %v1673_v49 = vpop.f32.mrf.mxu1  ;;  %v1603_v0 = vadd.f32 %v1602_v4, %v1532_v33 }
 0x3a5   :  { %v1604_v19 = vpop.f32.mrf.mxu0  ;;  %v1674_v56 = vadd.f32 %v1673_v49, %v1532_v33 }
 0x3a6   :  { %v1675_v3 = vpop.f32.mrf.mxu1  ;;  %v1605_v48 = vadd.f32 %v1604_v19, %v1532_v33 }
 0x3a7   :  { %v1676_v15 = vadd.f32 %v1675_v3, %v1532_v33 }
 0x3a8   :  { %v1828_v37 = vcombine.low %v1603_v0, %v1605_v48 }
 0x3a9   :  { %v1829_v44 = vcombine.low %v1674_v56, %v1676_v15 }
 0x3aa   :  { %v1838_v28 = vrot.slane %v1828_v37, %v1837_v5 }
 0x3ab   :  { %v1845_v14 = vrot.slane %v1829_v44, %v1837_v5 }
 0x3ad   :  { %v1860_v26 = vcombine.low %v1838_v28, %v1845_v14 }
 0x3af   :  { %v1868_v53 = vrot.slane %v1860_v26, %v1837_v5 }
 0x3c4   :  { %v1744_v2 = vpop.f32.mrf.mxu0 }
 0x3c5   :  { %v1815_v61 = vpop.f32.mrf.mxu1  ;;  %v1745_v27 = vadd.f32 %v1744_v2, %v1532_v33 }
 0x3c6   :  { %v1746_v45 = vpop.f32.mrf.mxu0  ;;  %v1816_v59 = vadd.f32 %v1815_v61, %v1532_v33 }
 0x3c7   :  { %v1747_v36 = vadd.f32 %v1746_v45, %v1532_v33  ;;  %v1817_v34 = vpop.f32.mrf.mxu1 }
 0x3c8   :  { %v1818_v52 = vadd.f32 %v1817_v34, %v1532_v33 }
 0x3c9   :  { %v1830_v46 = vcombine.low %v1745_v27, %v1747_v36 }
 0x3ca   :  { %v1831_v11 = vcombine.low %v1816_v59, %v1818_v52 }
 0x3cb   :  { %v1852_v41 = vrot.slane %v1830_v46, %v1837_v5 }
 0x3cc   :  { %v1859_v20 = vrot.slane %v1831_v11, %v1837_v5 }
 0x3ce   :  { %v1861_v16 = vcombine.low %v1852_v41, %v1859_v20 }
 0x3d0   :  { %v1875_v54 = vrot.slane %v1861_v16, %v1837_v5 }
 0x3d2   :  { %v1876_v35 = vcombine.low %v1868_v53, %v1875_v54 }
 0x3d4   :  { %v1878_v1 = vmul.f32 %v1876_v35, %v82_v42 }
 0x3d6   :  { %v1879_v43 = vadd.f32 %v1878_v1, %v1522_v39 }
 0x3d8   :  { %1880 = vst [vmem:[#allocation2] sm:$0xff] %v1879_v43 }
 0x3d9 PF:  { %v1886_v22 = vlaneseq  ;;  %vm1926_vm3 = vcmask 1040384   ;;  %s2454_s1 = smov [#allocation6]   ;;  %vm1952_vm4 = vcmask 0  }
 0x3da   :  { %s1960_s8 = sshll.u32 %s2454_s1, 4  ;;  %s1961_s8 = int_to_ptr.vmem [resolvable:$true] %s1960_s8 }
 0x3db   :  { %v1887_v63 = vshrl.u32 %v1886_v22, 7  ;;  %s2428_s0 = scalar_lea.vmem %s1961_s8, 16  ;;  %s2432_s6 = scalar_lea.vmem %s1961_s8, 32 }
 0x3dc   :  { %p2429_p1 = scmp.ne.s32.totalorder %s1961_s8, %s2428_s0  ;;  %p2433_p2 = scmp.lt.s32.totalorder %s1961_s8, %s1961_s8 }
 0x3dd   :  { %v1888_v50 = vsub.s32 0, %v1887_v63  ;;  %v1892_v17 = vsub.s32 1, %v1887_v63  ;;  %v1896_v57 = vsub.s32 2, %v1887_v63  ;;  %v1900_v13 = vsub.s32 3, %v1887_v63  ;;  %p2434_p3 = scmp.lt.s32.totalorder %s2432_s6, %s2428_s0 }
 0x3de   :  { %v1904_v6 = vsub.s32 4, %v1887_v63  ;;  %v1908_v30 = vsub.s32 5, %v1887_v63  ;;  %v1912_v7 = vsub.s32 6, %v1887_v63  ;;  %v1916_v18 = vsub.s32 7, %v1887_v63 }
 0x3df   :  { %v1884_v24 = vld [vmem:[#allocation2] sm:$0xff]  ;;  %p2435_p4 = por %p2434_p3, %p2433_p2 }
 0x3e0   :  { %v1889_v55 = vrot.slane %v1884_v24, %v1888_v50  ;;  %v1893_v51 = vrot.slane %v1884_v24, %v1892_v17  ;;  %v1897_v38 = vrot.slane %v1884_v24, %v1896_v57  ;;  %v1901_v12 = vrot.slane %v1884_v24, %v1900_v13 }
 0x3e1   :  { %v1905_v58 = vrot.slane %v1884_v24, %v1904_v6  ;;  %v1909_v47 = vrot.slane %v1884_v24, %v1908_v30  ;;  %v1913_v62 = vrot.slane %v1884_v24, %v1912_v7  ;;  %v1917_v19 = vrot.slane %v1884_v24, %v1916_v18  ;;  %p2436_p5 = pnand %p2435_p4, %p2429_p1 }
 0x3e2   :  { %v1927_v40 = vsel %vm1926_vm3, %v1889_v55, 0.0  ;;  %v1928_v60 = vsel %vm1926_vm3, %v1893_v51, 0.0  ;;  %v1930_v32 = vsel %vm1926_vm3, %v1897_v38, 0.0  ;;  %v1932_v4 = vsel %vm1926_vm3, %v1901_v12, 0.0 }
 0x3e3   :  { %v1929_v9 = vadd.f32 %v1928_v60, %v1927_v40  ;;  %v1934_v10 = vsel %vm1926_vm3, %v1905_v58, 0.0  ;;  %v1936_v3 = vsel %vm1926_vm3, %v1909_v47, 0.0  ;;  %v1938_v29 = vsel %vm1926_vm3, %v1913_v62, 0.0 }
 0x3e4   :  { %v1940_v48 = vsel %vm1926_vm3, %v1917_v19, 0.0 }
 0x3e5   :  { %v1931_v49 = vadd.f32 %v1930_v32, %v1929_v9 }
 0x3e7   :  { %v1933_v31 = vadd.f32 %v1932_v4, %v1931_v49 }
 0x3e9   :  { %v1935_v8 = vadd.f32 %v1934_v10, %v1933_v31 }
 0x3eb   :  { %v1937_v33 = vadd.f32 %v1936_v3, %v1935_v8 }
 0x3ed   :  { %v1939_v21 = vadd.f32 %v1938_v29, %v1937_v33 }
 0x3ef   :  { %v1941_v15 = vadd.f32 %v1940_v48, %v1939_v21 }
 0x3f1   :  { %1942 = vadd.xlane.f32.xlu0 %v1941_v15 }
 0x47a   :  { %v1943_v0 = vpop.xlane.xlu0 %1942 }
 0x47b   :  { %v1944_v56 = vrot.slane %v1943_v0, 4 }
 0x47d   :  { %v1945_v37 = vadd.f32 %v1944_v56, %v1943_v0 }
 0x47f   :  { %v1946_v5 = vrot.slane %v1945_v37, 2 }
 0x481   :  { %v1947_v44 = vadd.f32 %v1946_v5, %v1945_v37 }
 0x483   :  { %v1948_v2 = vrot.slane %v1947_v44, 1 }
 0x485   :  { %v1949_v61 = vadd.f32 %v1948_v2, %v1947_v44 }
 0x487   :  { %2025 = vpush %v1949_v61 }
 0x4b8   :  { %s2026_s17 = spop %2025 }
 0x4b9   :  { %v1951_v45 = vstv %s2026_s17 }
 0x4ba   :  { %1953 = vst.msk [vmem:[#allocation6] sm:$0x1] %vm1952_vm4, %v1951_v45 }
 0x4bb   :  { %2439 = shalt.err (!%p2436_p5)
}
 0x4bc   :  { %1963 = dma.vmem_to_hbm [thread:$0]  %s1961_s8, 16, %s3510_s9, [#allocation7]  }
 0x4bd   :  { %2448 = dma.done.wait [#allocation7], 16  }
 0x4be   :  { %2449 = vsyncadd [#allocation7], 4294967280 }
 0x4bf   :  { %1967 = vsyncpa [#allocation7], 1 }

</bundles_post_ra>
